<compile_context>
chip_gen: v5e
topology: v5e:2x2
jax: 0.10.0
libtpu: 0.0.40
codegen_flags: <defaults>
</compile_context>

<pallas_src>
import functools
import math

import jax
import jax.numpy as jnp
import numpy as np
from jax.experimental import pallas as pl
from jax.experimental.pallas import tpu as pltpu


def encoder_layer_kernel(
    x_ref, mask_ref,
    wqkv_ref, bqkv_ref, wo_ref, bo_ref,
    w1_ref, b1_ref, w2_ref, b2_ref,
    g1_ref, be1_ref, g2_ref, be2_ref,
    o_ref,
    *, num_heads, d_k, d_v,
):
    """One grid step = `bt` batch elements (bt*S token rows)."""
    cdt = wqkv_ref.dtype                       # MXU compute dtype (bf16 / f32)
    H = num_heads
    bt, S, D = x_ref.shape
    M = bt * S                                 # flattened token rows
    G = H * bt                                 # (head, batch) groups

    x = x_ref[...].reshape(M, D)               # f32 rows (merge leading dims)
    xc = x.astype(cdt)

    # --- fused Q/K/V projection: one wide MXU matmul, f32 accumulate --------
    # Column layout: [ Q (H*d_k) | K (H*d_k) | V (H*d_v) ].
    # 1/sqrt(d_k) is already folded into the Q columns of wqkv / bqkv.
    qkv = jnp.dot(xc, wqkv_ref[...], preferred_element_type=jnp.float32)
    qkv = qkv + bqkv_ref[...]                  # [M, 2*H*d_k + H*d_v]

    # --- head split: aligned lane slices only (data movement, no matmuls) ---
    def gather_heads(col0, width):
        # columns [col0, col0 + H*width) of qkv -> [G, S, width], g = h*bt + b
        pieces = [qkv[:, col0 + h * width: col0 + (h + 1) * width]
                  for h in range(H)]
        return jnp.stack(pieces).reshape(G, S, width)

    q = gather_heads(0, d_k)
    k = gather_heads(H * d_k, d_k)
    v = gather_heads(2 * H * d_k, d_v)

    # --- attention core (logits / softmax kept in f32) ----------------------
    logits = jnp.einsum('gqd,gkd->gqk', q.astype(cdt), k.astype(cdt),
                        preferred_element_type=jnp.float32)       # [G, S, S]
    bias = jnp.broadcast_to((mask_ref[...] * (-1e9))[None],
                            (H, bt, 1, S)).reshape(G, 1, S)
    logits = logits + bias
    m = jnp.max(logits, axis=-1, keepdims=True)
    p = jnp.exp(logits - m)
    denom = jnp.sum(p, axis=-1, keepdims=True)
    ctx = jnp.einsum('gqk,gkd->gqd', p.astype(cdt), v.astype(cdt),
                     preferred_element_type=jnp.float32)          # [G, S, d_v]
    ctx = ctx * pl.reciprocal(denom, approx=False)

    # --- output projection: head sum folded into one MXU contraction --------
    ctx = ctx.reshape(H, M, d_v)
    ctx = jnp.concatenate([ctx[h] for h in range(H)], axis=-1)    # [M, H*d_v]
    attn_out = jnp.dot(ctx.astype(cdt), wo_ref[...],
                       preferred_element_type=jnp.float32) + bo_ref[...]

    # dropout1 / dropout2 are identity (eval / deterministic forward).

    def layer_norm(y, g, b):
        mu = jnp.mean(y, axis=-1, keepdims=True)
        var = jnp.mean(y * y, axis=-1, keepdims=True) - mu * mu
        var = jnp.maximum(var, 0.0)            # guard against cancellation
        return (y - mu) * jax.lax.rsqrt(var + 1e-6) * g + b

    out1 = layer_norm(x + attn_out, g1_ref[...], be1_ref[...])

    # --- pointwise FFN -------------------------------------------------------
    h1 = jnp.dot(out1.astype(cdt), w1_ref[...],
                 preferred_element_type=jnp.float32) + b1_ref[...]
    h1 = jnp.maximum(h1, 0.0)
    ffn = jnp.dot(h1.astype(cdt), w2_ref[...],
                  preferred_element_type=jnp.float32) + b2_ref[...]

    out2 = layer_norm(out1 + ffn, g2_ref[...], be2_ref[...])
    o_ref[...] = out2.reshape(bt, S, D).astype(o_ref.dtype)


def _pick_batch_tile(batch, seq, target_rows=512):
    """Largest divisor of `batch` whose row count (bt*seq) stays <= target."""
    best = 1
    for cand in range(1, batch + 1):
        if batch % cand == 0 and cand * seq <= max(seq, target_rows):
            best = cand
    return best


def _const_spec(a):
    """Full-array BlockSpec for weights that never change across the grid."""
    nd = a.ndim
    idx = lambda i, _nd=nd: (0,) * _nd
    if hasattr(pl, "Buffered"):
        try:
            # single-buffered: constant index_map -> no double-buffer copy
            return pl.BlockSpec(a.shape, idx, pipeline_mode=pl.Buffered(1))
        except TypeError:
            pass
    return pl.BlockSpec(a.shape, idx)


def encoder_layer(x, mask, params, *, num_heads, d_k, d_v,
                  compute_dtype=jnp.bfloat16, batch_tile=None):
    B, S, D = x.shape
    H = num_heads
    d_ff = params["w1"].shape[1]

    bt = _pick_batch_tile(B, S) if batch_tile is None else batch_tile
    assert B % bt == 0, "batch tile must divide batch"

    # Fused QKV weight ([Q | K | V] columns); 1/sqrt(d_k) folded into Q cols.
    inv = 1.0 / math.sqrt(d_k)
    wqkv = jnp.concatenate(
        [params["wq"] * inv, params["wk"], params["wv"]], axis=1)   # [D, 3*H*64]
    bqkv = jnp.concatenate(
        [params["bq"] * inv, params["bk"], params["bv"]], axis=1)   # [1, 3*H*64]

    # Matmul weights in compute dtype; biases / LayerNorm params stay f32.
    weights = [
        wqkv.astype(compute_dtype), bqkv,
        params["wo"].astype(compute_dtype), params["bo"],
        params["w1"].astype(compute_dtype), params["b1"],
        params["w2"].astype(compute_dtype), params["b2"],
        params["g1"], params["be1"], params["g2"], params["be2"],
    ]

    # Explicit VMEM budget from the resident footprint; capped under the v7x
    # 64 MiB ceiling so an overrun fails at compile time instead of spilling.
    def nbytes(a):
        return int(a.size) * a.dtype.itemsize
    M, G = bt * S, H * bt
    weight_bytes = sum(nbytes(w) for w in weights)              # single-buffered
    io_bytes = 2 * 4 * (2 * bt * S * D + bt * S)                # x/out/mask (x2 buf)
    inter_bytes = 4 * (2 * M * (2 * H * d_k + H * d_v)          # qkv + head copies
                       + 2 * G * S * S                          # logits + p
                       + 2 * G * S * d_v + M * H * d_v          # ctx
                       + M * d_ff + 6 * M * D)                  # ffn + residuals
    vmem_limit = min(weight_bytes + io_bytes + inter_bytes + (24 << 20),
                     60 << 20)

    kernel = functools.partial(
        encoder_layer_kernel, num_heads=H, d_k=d_k, d_v=d_v)

    return pl.pallas_call(
        kernel,
        out_shape=jax.ShapeDtypeStruct((B, S, D), x.dtype),
        grid_spec=pltpu.PrefetchScalarGridSpec(
            num_scalar_prefetch=0,
            grid=(B // bt,),
            in_specs=[
                pl.BlockSpec((bt, S, D), lambda i: (i, 0, 0)),   # x
                pl.BlockSpec((bt, 1, S), lambda i: (i, 0, 0)),   # mask
            ] + [_const_spec(w) for w in weights],
            out_specs=pl.BlockSpec((bt, S, D), lambda i: (i, 0, 0)),
        ),
        compiler_params=pltpu.CompilerParams(
            dimension_semantics=("parallel",),   # batch tiles -> 2 TCs on v7x
            vmem_limit_bytes=vmem_limit,
        ),
    )(x, mask, *weights)


def encoder_layer_ref(x, mask, p, *, num_heads, d_k, d_v):
    """Pure-JAX f32 reference for correctness checking."""
    B, S, D = x.shape
    q = (x @ p["wq"] + p["bq"]).reshape(B, S, num_heads, d_k).transpose(0, 2, 1, 3)
    k = (x @ p["wk"] + p["bk"]).reshape(B, S, num_heads, d_k).transpose(0, 2, 1, 3)
    v = (x @ p["wv"] + p["bv"]).reshape(B, S, num_heads, d_v).transpose(0, 2, 1, 3)
    logits = jnp.einsum("bhqd,bhkd->bhqk", q, k) / math.sqrt(d_k)
    logits = logits + mask[:, None, :, :] * (-1e9)
    attn = jax.nn.softmax(logits, axis=-1)
    ctx = jnp.einsum("bhqk,bhkd->bhqd", attn, v)
    ctx = ctx.transpose(0, 2, 1, 3).reshape(B, S, num_heads * d_v)
    attn_out = ctx @ p["wo"] + p["bo"]

    def ln(y, g, b):
        mu = jnp.mean(y, axis=-1, keepdims=True)
        var = jnp.mean((y - mu) ** 2, axis=-1, keepdims=True)
        return (y - mu) * jax.lax.rsqrt(var + 1e-6) * g + b

    out1 = ln(x + attn_out, p["g1"], p["be1"])
    ffn = jnp.maximum(out1 @ p["w1"] + p["b1"], 0.0) @ p["w2"] + p["b2"]
    return ln(out1 + ffn, p["g2"], p["be2"])


def init_params(key, d_model, num_heads, d_k, d_v, d_ff):
    ks = jax.random.split(key, 8)
    s = 0.02
    return {
        "wq": s * jax.random.normal(ks[0], (d_model, num_heads * d_k), jnp.float32),
        "bq": jnp.zeros((1, num_heads * d_k), jnp.float32),
        "wk": s * jax.random.normal(ks[1], (d_model, num_heads * d_k), jnp.float32),
        "bk": jnp.zeros((1, num_heads * d_k), jnp.float32),
        "wv": s * jax.random.normal(ks[2], (d_model, num_heads * d_v), jnp.float32),
        "bv": jnp.zeros((1, num_heads * d_v), jnp.float32),
        "wo": s * jax.random.normal(ks[3], (num_heads * d_v, d_model), jnp.float32),
        "bo": s * jax.random.normal(ks[4], (1, d_model), jnp.float32),
        "w1": s * jax.random.normal(ks[5], (d_model, d_ff), jnp.float32),
        "b1": jnp.zeros((1, d_ff), jnp.float32),
        "w2": s * jax.random.normal(ks[6], (d_ff, d_model), jnp.float32),
        "b2": jnp.zeros((1, d_model), jnp.float32),
        "g1": jnp.ones((1, d_model), jnp.float32),
        "be1": jnp.zeros((1, d_model), jnp.float32),
        "g2": jnp.ones((1, d_model), jnp.float32),
        "be2": jnp.zeros((1, d_model), jnp.float32),
    }


if __name__ == "__main__":
    B, S = 2, 8
    d_model, num_heads, d_ff = 32, 4, 64
    d_k = d_v = 64   # MultiHeadAttention(d_model, num_heads, 64, 64)

    key = jax.random.PRNGKey(0)
    kx, kp = jax.random.split(key)
    x = jax.random.normal(kx, (B, S, d_model), jnp.float32)
    # padding mask: last two positions of batch 1 are padded
    mask = jnp.zeros((B, 1, S), jnp.float32).at[1, 0, -2:].set(1.0)
    params = init_params(kp, d_model, num_heads, d_k, d_v, d_ff)

    ref = encoder_layer_ref(x, mask, params,
                            num_heads=num_heads, d_k=d_k, d_v=d_v)

    # f32 compute path (tight check)
    out_f32 = jax.block_until_ready(
        encoder_layer(x, mask, params, num_heads=num_heads, d_k=d_k, d_v=d_v,
                      compute_dtype=jnp.float32))
    np.testing.assert_allclose(np.asarray(out_f32), np.asarray(ref),
                               rtol=2e-3, atol=2e-3)

    # bf16-matmul compute path (default / MXU-friendly; looser tolerance)
    out_bf16 = jax.block_until_ready(
        encoder_layer(x, mask, params, num_heads=num_heads, d_k=d_k, d_v=d_v,
                      compute_dtype=jnp.bfloat16))
    np.testing.assert_allclose(np.asarray(out_bf16), np.asarray(ref),
                               rtol=4e-2, atol=4e-2)

    print("KERNEL_OK")
</pallas_src>

<mosaic_0001>
module attributes {stable_mosaic.version = 11 : i64} {
  func.func @encoder_layer_kernel(%arg0: i32, %arg1: memref<2x8x32xf32, #tpu.memory_space<vmem>>, %arg2: memref<2x1x8xf32, #tpu.memory_space<vmem>>, %arg3: memref<32x768xf32, #tpu.memory_space<vmem>>, %arg4: memref<1x768xf32, #tpu.memory_space<vmem>>, %arg5: memref<256x32xf32, #tpu.memory_space<vmem>>, %arg6: memref<1x32xf32, #tpu.memory_space<vmem>>, %arg7: memref<32x64xf32, #tpu.memory_space<vmem>>, %arg8: memref<1x64xf32, #tpu.memory_space<vmem>>, %arg9: memref<64x32xf32, #tpu.memory_space<vmem>>, %arg10: memref<1x32xf32, #tpu.memory_space<vmem>>, %arg11: memref<1x32xf32, #tpu.memory_space<vmem>>, %arg12: memref<1x32xf32, #tpu.memory_space<vmem>>, %arg13: memref<1x32xf32, #tpu.memory_space<vmem>>, %arg14: memref<1x32xf32, #tpu.memory_space<vmem>>, %arg15: memref<2x8x32xf32, #tpu.memory_space<vmem>>) attributes {dimension_semantics = [#tpu.dimension_semantics<parallel>], iteration_bounds = array<i64: 1>, scalar_prefetch = 0 : i64, scratch_operands = 0 : i64, tpu.core_type = #tpu.core_type<tc>, window_params = [{transform_indices = @transform_0, window_bounds = array<i64: 2, 8, 32>}, {transform_indices = @transform_1, window_bounds = array<i64: 2, 1, 8>}, {pipeline_mode = #tpu.pipeline_mode<synchronous>, transform_indices = @transform_2, window_bounds = array<i64: 32, 768>}, {pipeline_mode = #tpu.pipeline_mode<synchronous>, transform_indices = @transform_3, window_bounds = array<i64: 1, 768>}, {pipeline_mode = #tpu.pipeline_mode<synchronous>, transform_indices = @transform_4, window_bounds = array<i64: 256, 32>}, {pipeline_mode = #tpu.pipeline_mode<synchronous>, transform_indices = @transform_5, window_bounds = array<i64: 1, 32>}, {pipeline_mode = #tpu.pipeline_mode<synchronous>, transform_indices = @transform_6, window_bounds = array<i64: 32, 64>}, {pipeline_mode = #tpu.pipeline_mode<synchronous>, transform_indices = @transform_7, window_bounds = array<i64: 1, 64>}, {pipeline_mode = #tpu.pipeline_mode<synchronous>, transform_indices = @transform_8, window_bounds = array<i64: 64, 32>}, {pipeline_mode = #tpu.pipeline_mode<synchronous>, transform_indices = @transform_9, window_bounds = array<i64: 1, 32>}, {pipeline_mode = #tpu.pipeline_mode<synchronous>, transform_indices = @transform_10, window_bounds = array<i64: 1, 32>}, {pipeline_mode = #tpu.pipeline_mode<synchronous>, transform_indices = @transform_11, window_bounds = array<i64: 1, 32>}, {pipeline_mode = #tpu.pipeline_mode<synchronous>, transform_indices = @transform_12, window_bounds = array<i64: 1, 32>}, {pipeline_mode = #tpu.pipeline_mode<synchronous>, transform_indices = @transform_13, window_bounds = array<i64: 1, 32>}, {transform_indices = @transform_14, window_bounds = array<i64: 2, 8, 32>}]} {
    %c0 = arith.constant 0 : index
    %c0_0 = arith.constant 0 : index
    %c0_1 = arith.constant 0 : index
    %0 = vector.load %arg1[%c0, %c0_0, %c0_1] : memref<2x8x32xf32, #tpu.memory_space<vmem>>, vector<2x8x32xf32>
    %1 = vector.shape_cast %0 : vector<2x8x32xf32> to vector<16x32xf32>
    %c0_2 = arith.constant 0 : index
    %c0_3 = arith.constant 0 : index
    %2 = vector.load %arg3[%c0_2, %c0_3] : memref<32x768xf32, #tpu.memory_space<vmem>>, vector<32x768xf32>
    %cst = arith.constant dense<0.000000e+00> : vector<16x768xf32>
    %3 = tpu.matmul %1, %2, %cst {dimension_numbers = #tpu.dot_dimension_numbers<[1], [0], [0], [1], [0, 0, 1, 1], [], []>} : vector<16x32xf32>, vector<32x768xf32>, vector<16x768xf32> -> vector<16x768xf32>
    %c0_4 = arith.constant 0 : index
    %c0_5 = arith.constant 0 : index
    %4 = vector.load %arg4[%c0_4, %c0_5] : memref<1x768xf32, #tpu.memory_space<vmem>>, vector<1x768xf32>
    %5 = vector.broadcast %4 : vector<1x768xf32> to vector<16x768xf32>
    %6 = arith.addf %3, %5 : vector<16x768xf32>
    %7 = vector.extract_strided_slice %6 {offsets = [0, 0], sizes = [16, 64], strides = [1, 1]} : vector<16x768xf32> to vector<16x64xf32>
    %8 = vector.extract_strided_slice %6 {offsets = [0, 64], sizes = [16, 64], strides = [1, 1]} : vector<16x768xf32> to vector<16x64xf32>
    %9 = vector.extract_strided_slice %6 {offsets = [0, 128], sizes = [16, 64], strides = [1, 1]} : vector<16x768xf32> to vector<16x64xf32>
    %10 = vector.extract_strided_slice %6 {offsets = [0, 192], sizes = [16, 64], strides = [1, 1]} : vector<16x768xf32> to vector<16x64xf32>
    %11 = vector.shape_cast %7 : vector<16x64xf32> to vector<1x16x64xf32>
    %12 = vector.shape_cast %8 : vector<16x64xf32> to vector<1x16x64xf32>
    %13 = vector.shape_cast %9 : vector<16x64xf32> to vector<1x16x64xf32>
    %14 = vector.shape_cast %10 : vector<16x64xf32> to vector<1x16x64xf32>
    %15 = tpu.concatenate %11, %12, %13, %14 in 0 : vector<1x16x64xf32>, vector<1x16x64xf32>, vector<1x16x64xf32>, vector<1x16x64xf32> -> vector<4x16x64xf32>
    %16 = vector.shape_cast %15 : vector<4x16x64xf32> to vector<8x8x64xf32>
    %17 = vector.extract_strided_slice %6 {offsets = [0, 256], sizes = [16, 64], strides = [1, 1]} : vector<16x768xf32> to vector<16x64xf32>
    %18 = vector.extract_strided_slice %6 {offsets = [0, 320], sizes = [16, 64], strides = [1, 1]} : vector<16x768xf32> to vector<16x64xf32>
    %19 = vector.extract_strided_slice %6 {offsets = [0, 384], sizes = [16, 64], strides = [1, 1]} : vector<16x768xf32> to vector<16x64xf32>
    %20 = vector.extract_strided_slice %6 {offsets = [0, 448], sizes = [16, 64], strides = [1, 1]} : vector<16x768xf32> to vector<16x64xf32>
    %21 = vector.shape_cast %17 : vector<16x64xf32> to vector<1x16x64xf32>
    %22 = vector.shape_cast %18 : vector<16x64xf32> to vector<1x16x64xf32>
    %23 = vector.shape_cast %19 : vector<16x64xf32> to vector<1x16x64xf32>
    %24 = vector.shape_cast %20 : vector<16x64xf32> to vector<1x16x64xf32>
    %25 = tpu.concatenate %21, %22, %23, %24 in 0 : vector<1x16x64xf32>, vector<1x16x64xf32>, vector<1x16x64xf32>, vector<1x16x64xf32> -> vector<4x16x64xf32>
    %26 = vector.shape_cast %25 : vector<4x16x64xf32> to vector<8x8x64xf32>
    %27 = vector.extract_strided_slice %6 {offsets = [0, 512], sizes = [16, 64], strides = [1, 1]} : vector<16x768xf32> to vector<16x64xf32>
    %28 = vector.extract_strided_slice %6 {offsets = [0, 576], sizes = [16, 64], strides = [1, 1]} : vector<16x768xf32> to vector<16x64xf32>
    %29 = vector.extract_strided_slice %6 {offsets = [0, 640], sizes = [16, 64], strides = [1, 1]} : vector<16x768xf32> to vector<16x64xf32>
    %30 = vector.extract_strided_slice %6 {offsets = [0, 704], sizes = [16, 64], strides = [1, 1]} : vector<16x768xf32> to vector<16x64xf32>
    %31 = vector.shape_cast %27 : vector<16x64xf32> to vector<1x16x64xf32>
    %32 = vector.shape_cast %28 : vector<16x64xf32> to vector<1x16x64xf32>
    %33 = vector.shape_cast %29 : vector<16x64xf32> to vector<1x16x64xf32>
    %34 = vector.shape_cast %30 : vector<16x64xf32> to vector<1x16x64xf32>
    %35 = tpu.concatenate %31, %32, %33, %34 in 0 : vector<1x16x64xf32>, vector<1x16x64xf32>, vector<1x16x64xf32>, vector<1x16x64xf32> -> vector<4x16x64xf32>
    %36 = vector.shape_cast %35 : vector<4x16x64xf32> to vector<8x8x64xf32>
    "tpu.trace_start"() <{level = 10 : i32, message = "gqd,gkd->gqk"}> : () -> ()
    %cst_6 = arith.constant dense<0.000000e+00> : vector<8x8x8xf32>
    %37 = tpu.matmul %16, %26, %cst_6 {dimension_numbers = #tpu.dot_dimension_numbers<[2], [2], [1], [1], [0, 0, 0, 1, 1, 1], [0], [0]>} : vector<8x8x64xf32>, vector<8x8x64xf32>, vector<8x8x8xf32> -> vector<8x8x8xf32>
    "tpu.trace_stop"() : () -> ()
    %c0_7 = arith.constant 0 : index
    %c0_8 = arith.constant 0 : index
    %c0_9 = arith.constant 0 : index
    %38 = vector.load %arg2[%c0_7, %c0_8, %c0_9] : memref<2x1x8xf32, #tpu.memory_space<vmem>>, vector<2x1x8xf32>
    %cst_10 = arith.constant -1.000000e+09 : f32
    %39 = vector.broadcast %cst_10 : f32 to vector<2x1x8xf32>
    %40 = arith.mulf %38, %39 : vector<2x1x8xf32>
    %41 = vector.shape_cast %40 : vector<2x1x8xf32> to vector<1x2x1x8xf32>
    %42 = vector.shape_cast %41 : vector<1x2x1x8xf32> to vector<1x2x1x8xf32>
    %43 = vector.broadcast %42 : vector<1x2x1x8xf32> to vector<4x2x1x8xf32>
    %44 = vector.shape_cast %43 : vector<4x2x1x8xf32> to vector<8x1x8xf32>
    %45 = vector.broadcast %44 : vector<8x1x8xf32> to vector<8x8x8xf32>
    %46 = arith.addf %37, %45 : vector<8x8x8xf32>
    %cst_11 = arith.constant dense<0xFF800000> : vector<8x8xf32>
    %47 = vector.multi_reduction <maximumf>, %46, %cst_11 [2] : vector<8x8x8xf32> to vector<8x8xf32>
    %48 = vector.shape_cast %47 : vector<8x8xf32> to vector<8x8x1xf32>
    %49 = vector.broadcast %48 : vector<8x8x1xf32> to vector<8x8x8xf32>
    %50 = arith.subf %46, %49 : vector<8x8x8xf32>
    %51 = math.exp %50 : vector<8x8x8xf32>
    %cst_12 = arith.constant dense<0.000000e+00> : vector<8x8xf32>
    %52 = vector.multi_reduction <add>, %51, %cst_12 [2] : vector<8x8x8xf32> to vector<8x8xf32>
    %53 = vector.shape_cast %52 : vector<8x8xf32> to vector<8x8x1xf32>
    "tpu.trace_start"() <{level = 10 : i32, message = "gqk,gkd->gqd"}> : () -> ()
    %cst_13 = arith.constant dense<0.000000e+00> : vector<8x8x64xf32>
    %54 = tpu.matmul %51, %36, %cst_13 {dimension_numbers = #tpu.dot_dimension_numbers<[2], [1], [1], [2], [0, 0, 0, 1, 1, 2], [0], [0]>} : vector<8x8x8xf32>, vector<8x8x64xf32>, vector<8x8x64xf32> -> vector<8x8x64xf32>
    "tpu.trace_stop"() : () -> ()
    %55 = tpu.reciprocal %53 : vector<8x8x1xf32> -> vector<8x8x1xf32>
    %56 = vector.broadcast %55 : vector<8x8x1xf32> to vector<8x8x64xf32>
    %57 = arith.mulf %54, %56 : vector<8x8x64xf32>
    %58 = vector.shape_cast %57 : vector<8x8x64xf32> to vector<4x16x64xf32>
    %59 = vector.extract_strided_slice %58 {offsets = [0, 0, 0], sizes = [1, 16, 64], strides = [1, 1, 1]} : vector<4x16x64xf32> to vector<1x16x64xf32>
    %60 = vector.shape_cast %59 : vector<1x16x64xf32> to vector<16x64xf32>
    %61 = vector.extract_strided_slice %58 {offsets = [1, 0, 0], sizes = [1, 16, 64], strides = [1, 1, 1]} : vector<4x16x64xf32> to vector<1x16x64xf32>
    %62 = vector.shape_cast %61 : vector<1x16x64xf32> to vector<16x64xf32>
    %63 = vector.extract_strided_slice %58 {offsets = [2, 0, 0], sizes = [1, 16, 64], strides = [1, 1, 1]} : vector<4x16x64xf32> to vector<1x16x64xf32>
    %64 = vector.shape_cast %63 : vector<1x16x64xf32> to vector<16x64xf32>
    %65 = vector.extract_strided_slice %58 {offsets = [3, 0, 0], sizes = [1, 16, 64], strides = [1, 1, 1]} : vector<4x16x64xf32> to vector<1x16x64xf32>
    %66 = vector.shape_cast %65 : vector<1x16x64xf32> to vector<16x64xf32>
    %67 = tpu.concatenate %60, %62, %64, %66 in 1 : vector<16x64xf32>, vector<16x64xf32>, vector<16x64xf32>, vector<16x64xf32> -> vector<16x256xf32>
    %c0_14 = arith.constant 0 : index
    %c0_15 = arith.constant 0 : index
    %68 = vector.load %arg5[%c0_14, %c0_15] : memref<256x32xf32, #tpu.memory_space<vmem>>, vector<256x32xf32>
    %cst_16 = arith.constant dense<0.000000e+00> : vector<16x32xf32>
    %69 = tpu.matmul %67, %68, %cst_16 {dimension_numbers = #tpu.dot_dimension_numbers<[1], [0], [0], [1], [0, 0, 1, 1], [], []>} : vector<16x256xf32>, vector<256x32xf32>, vector<16x32xf32> -> vector<16x32xf32>
    %c0_17 = arith.constant 0 : index
    %c0_18 = arith.constant 0 : index
    %70 = vector.load %arg6[%c0_17, %c0_18] : memref<1x32xf32, #tpu.memory_space<vmem>>, vector<1x32xf32>
    %71 = vector.broadcast %70 : vector<1x32xf32> to vector<16x32xf32>
    %72 = arith.addf %69, %71 : vector<16x32xf32>
    %73 = arith.addf %1, %72 : vector<16x32xf32>
    %c0_19 = arith.constant 0 : index
    %c0_20 = arith.constant 0 : index
    %74 = vector.load %arg11[%c0_19, %c0_20] : memref<1x32xf32, #tpu.memory_space<vmem>>, vector<1x32xf32>
    %c0_21 = arith.constant 0 : index
    %c0_22 = arith.constant 0 : index
    %75 = vector.load %arg12[%c0_21, %c0_22] : memref<1x32xf32, #tpu.memory_space<vmem>>, vector<1x32xf32>
    %cst_23 = arith.constant dense<0.000000e+00> : vector<16xf32>
    %76 = vector.multi_reduction <add>, %73, %cst_23 [1] : vector<16x32xf32> to vector<16xf32>
    %77 = vector.shape_cast %76 : vector<16xf32> to vector<16x1xf32>
    %cst_24 = arith.constant 3.200000e+01 : f32
    %78 = vector.broadcast %cst_24 : f32 to vector<16x1xf32>
    %79 = arith.divf %77, %78 : vector<16x1xf32>
    %80 = arith.mulf %73, %73 : vector<16x32xf32>
    %cst_25 = arith.constant dense<0.000000e+00> : vector<16xf32>
    %81 = vector.multi_reduction <add>, %80, %cst_25 [1] : vector<16x32xf32> to vector<16xf32>
    %82 = vector.shape_cast %81 : vector<16xf32> to vector<16x1xf32>
    %cst_26 = arith.constant 3.200000e+01 : f32
    %83 = vector.broadcast %cst_26 : f32 to vector<16x1xf32>
    %84 = arith.divf %82, %83 : vector<16x1xf32>
    %85 = arith.mulf %79, %79 : vector<16x1xf32>
    %86 = arith.subf %84, %85 : vector<16x1xf32>
    %cst_27 = arith.constant 0.000000e+00 : f32
    %87 = vector.broadcast %cst_27 : f32 to vector<16x1xf32>
    %88 = arith.maximumf %86, %87 : vector<16x1xf32>
    %89 = vector.broadcast %79 : vector<16x1xf32> to vector<16x32xf32>
    %90 = arith.subf %73, %89 : vector<16x32xf32>
    %cst_28 = arith.constant 9.99999997E-7 : f32
    %91 = vector.broadcast %cst_28 : f32 to vector<16x1xf32>
    %92 = arith.addf %88, %91 : vector<16x1xf32>
    %93 = math.rsqrt %92 : vector<16x1xf32>
    %94 = vector.broadcast %93 : vector<16x1xf32> to vector<16x32xf32>
    %95 = arith.mulf %90, %94 : vector<16x32xf32>
    %96 = vector.broadcast %74 : vector<1x32xf32> to vector<16x32xf32>
    %97 = arith.mulf %95, %96 : vector<16x32xf32>
    %98 = vector.broadcast %75 : vector<1x32xf32> to vector<16x32xf32>
    %99 = arith.addf %97, %98 : vector<16x32xf32>
    %c0_29 = arith.constant 0 : index
    %c0_30 = arith.constant 0 : index
    %100 = vector.load %arg7[%c0_29, %c0_30] : memref<32x64xf32, #tpu.memory_space<vmem>>, vector<32x64xf32>
    %cst_31 = arith.constant dense<0.000000e+00> : vector<16x64xf32>
    %101 = tpu.matmul %99, %100, %cst_31 {dimension_numbers = #tpu.dot_dimension_numbers<[1], [0], [0], [1], [0, 0, 1, 1], [], []>} : vector<16x32xf32>, vector<32x64xf32>, vector<16x64xf32> -> vector<16x64xf32>
    %c0_32 = arith.constant 0 : index
    %c0_33 = arith.constant 0 : index
    %102 = vector.load %arg8[%c0_32, %c0_33] : memref<1x64xf32, #tpu.memory_space<vmem>>, vector<1x64xf32>
    %103 = vector.broadcast %102 : vector<1x64xf32> to vector<16x64xf32>
    %104 = arith.addf %101, %103 : vector<16x64xf32>
    %cst_34 = arith.constant 0.000000e+00 : f32
    %105 = vector.broadcast %cst_34 : f32 to vector<16x64xf32>
    %106 = arith.maximumf %104, %105 : vector<16x64xf32>
    %c0_35 = arith.constant 0 : index
    %c0_36 = arith.constant 0 : index
    %107 = vector.load %arg9[%c0_35, %c0_36] : memref<64x32xf32, #tpu.memory_space<vmem>>, vector<64x32xf32>
    %cst_37 = arith.constant dense<0.000000e+00> : vector<16x32xf32>
    %108 = tpu.matmul %106, %107, %cst_37 {dimension_numbers = #tpu.dot_dimension_numbers<[1], [0], [0], [1], [0, 0, 1, 1], [], []>} : vector<16x64xf32>, vector<64x32xf32>, vector<16x32xf32> -> vector<16x32xf32>
    %c0_38 = arith.constant 0 : index
    %c0_39 = arith.constant 0 : index
    %109 = vector.load %arg10[%c0_38, %c0_39] : memref<1x32xf32, #tpu.memory_space<vmem>>, vector<1x32xf32>
    %110 = vector.broadcast %109 : vector<1x32xf32> to vector<16x32xf32>
    %111 = arith.addf %108, %110 : vector<16x32xf32>
    %112 = arith.addf %99, %111 : vector<16x32xf32>
    %c0_40 = arith.constant 0 : index
    %c0_41 = arith.constant 0 : index
    %113 = vector.load %arg13[%c0_40, %c0_41] : memref<1x32xf32, #tpu.memory_space<vmem>>, vector<1x32xf32>
    %c0_42 = arith.constant 0 : index
    %c0_43 = arith.constant 0 : index
    %114 = vector.load %arg14[%c0_42, %c0_43] : memref<1x32xf32, #tpu.memory_space<vmem>>, vector<1x32xf32>
    %cst_44 = arith.constant dense<0.000000e+00> : vector<16xf32>
    %115 = vector.multi_reduction <add>, %112, %cst_44 [1] : vector<16x32xf32> to vector<16xf32>
    %116 = vector.shape_cast %115 : vector<16xf32> to vector<16x1xf32>
    %cst_45 = arith.constant 3.200000e+01 : f32
    %117 = vector.broadcast %cst_45 : f32 to vector<16x1xf32>
    %118 = arith.divf %116, %117 : vector<16x1xf32>
    %119 = arith.mulf %112, %112 : vector<16x32xf32>
    %cst_46 = arith.constant dense<0.000000e+00> : vector<16xf32>
    %120 = vector.multi_reduction <add>, %119, %cst_46 [1] : vector<16x32xf32> to vector<16xf32>
    %121 = vector.shape_cast %120 : vector<16xf32> to vector<16x1xf32>
    %cst_47 = arith.constant 3.200000e+01 : f32
    %122 = vector.broadcast %cst_47 : f32 to vector<16x1xf32>
    %123 = arith.divf %121, %122 : vector<16x1xf32>
    %124 = arith.mulf %118, %118 : vector<16x1xf32>
    %125 = arith.subf %123, %124 : vector<16x1xf32>
    %cst_48 = arith.constant 0.000000e+00 : f32
    %126 = vector.broadcast %cst_48 : f32 to vector<16x1xf32>
    %127 = arith.maximumf %125, %126 : vector<16x1xf32>
    %128 = vector.broadcast %118 : vector<16x1xf32> to vector<16x32xf32>
    %129 = arith.subf %112, %128 : vector<16x32xf32>
    %cst_49 = arith.constant 9.99999997E-7 : f32
    %130 = vector.broadcast %cst_49 : f32 to vector<16x1xf32>
    %131 = arith.addf %127, %130 : vector<16x1xf32>
    %132 = math.rsqrt %131 : vector<16x1xf32>
    %133 = vector.broadcast %132 : vector<16x1xf32> to vector<16x32xf32>
    %134 = arith.mulf %129, %133 : vector<16x32xf32>
    %135 = vector.broadcast %113 : vector<1x32xf32> to vector<16x32xf32>
    %136 = arith.mulf %134, %135 : vector<16x32xf32>
    %137 = vector.broadcast %114 : vector<1x32xf32> to vector<16x32xf32>
    %138 = arith.addf %136, %137 : vector<16x32xf32>
    %139 = vector.shape_cast %138 : vector<16x32xf32> to vector<2x8x32xf32>
    %c0_50 = arith.constant 0 : index
    %c0_51 = arith.constant 0 : index
    %c0_52 = arith.constant 0 : index
    %140 = vector.load %arg15[%c0_50, %c0_51, %c0_52] : memref<2x8x32xf32, #tpu.memory_space<vmem>>, vector<2x8x32xf32>
    tpu.vector_store %arg15[%c0_50, %c0_51, %c0_52], %139 {strides = array<i32>} : memref<2x8x32xf32, #tpu.memory_space<vmem>>, vector<2x8x32xf32>,
    return
  }
  func.func @transform_0(%arg0: i32) -> (i32, i32, i32) {
    %c0_i32 = arith.constant 0 : i32
    %c0_i32_0 = arith.constant 0 : i32
    %c0_i32_1 = arith.constant 0 : i32
    return %arg0, %c0_i32, %c0_i32_0 : i32, i32, i32
  }
  func.func @transform_1(%arg0: i32) -> (i32, i32, i32) {
    %c0_i32 = arith.constant 0 : i32
    %c0_i32_0 = arith.constant 0 : i32
    %c0_i32_1 = arith.constant 0 : i32
    return %arg0, %c0_i32, %c0_i32_0 : i32, i32, i32
  }
  func.func @transform_2(%arg0: i32) -> (i32, i32) {
    %c0_i32 = arith.constant 0 : i32
    %c0_i32_0 = arith.constant 0 : i32
    %c0_i32_1 = arith.constant 0 : i32
    return %c0_i32, %c0_i32_0 : i32, i32
  }
  func.func @transform_3(%arg0: i32) -> (i32, i32) {
    %c0_i32 = arith.constant 0 : i32
    %c0_i32_0 = arith.constant 0 : i32
    %c0_i32_1 = arith.constant 0 : i32
    return %c0_i32, %c0_i32_0 : i32, i32
  }
  func.func @transform_4(%arg0: i32) -> (i32, i32) {
    %c0_i32 = arith.constant 0 : i32
    %c0_i32_0 = arith.constant 0 : i32
    %c0_i32_1 = arith.constant 0 : i32
    return %c0_i32, %c0_i32_0 : i32, i32
  }
  func.func @transform_5(%arg0: i32) -> (i32, i32) {
    %c0_i32 = arith.constant 0 : i32
    %c0_i32_0 = arith.constant 0 : i32
    %c0_i32_1 = arith.constant 0 : i32
    return %c0_i32, %c0_i32_0 : i32, i32
  }
  func.func @transform_6(%arg0: i32) -> (i32, i32) {
    %c0_i32 = arith.constant 0 : i32
    %c0_i32_0 = arith.constant 0 : i32
    %c0_i32_1 = arith.constant 0 : i32
    return %c0_i32, %c0_i32_0 : i32, i32
  }
  func.func @transform_7(%arg0: i32) -> (i32, i32) {
    %c0_i32 = arith.constant 0 : i32
    %c0_i32_0 = arith.constant 0 : i32
    %c0_i32_1 = arith.constant 0 : i32
    return %c0_i32, %c0_i32_0 : i32, i32
  }
  func.func @transform_8(%arg0: i32) -> (i32, i32) {
    %c0_i32 = arith.constant 0 : i32
    %c0_i32_0 = arith.constant 0 : i32
    %c0_i32_1 = arith.constant 0 : i32
    return %c0_i32, %c0_i32_0 : i32, i32
  }
  func.func @transform_9(%arg0: i32) -> (i32, i32) {
    %c0_i32 = arith.constant 0 : i32
    %c0_i32_0 = arith.constant 0 : i32
    %c0_i32_1 = arith.constant 0 : i32
    return %c0_i32, %c0_i32_0 : i32, i32
  }
  func.func @transform_10(%arg0: i32) -> (i32, i32) {
    %c0_i32 = arith.constant 0 : i32
    %c0_i32_0 = arith.constant 0 : i32
    %c0_i32_1 = arith.constant 0 : i32
    return %c0_i32, %c0_i32_0 : i32, i32
  }
  func.func @transform_11(%arg0: i32) -> (i32, i32) {
    %c0_i32 = arith.constant 0 : i32
    %c0_i32_0 = arith.constant 0 : i32
    %c0_i32_1 = arith.constant 0 : i32
    return %c0_i32, %c0_i32_0 : i32, i32
  }
  func.func @transform_12(%arg0: i32) -> (i32, i32) {
    %c0_i32 = arith.constant 0 : i32
    %c0_i32_0 = arith.constant 0 : i32
    %c0_i32_1 = arith.constant 0 : i32
    return %c0_i32, %c0_i32_0 : i32, i32
  }
  func.func @transform_13(%arg0: i32) -> (i32, i32) {
    %c0_i32 = arith.constant 0 : i32
    %c0_i32_0 = arith.constant 0 : i32
    %c0_i32_1 = arith.constant 0 : i32
    return %c0_i32, %c0_i32_0 : i32, i32
  }
  func.func @transform_14(%arg0: i32) -> (i32, i32, i32) {
    %c0_i32 = arith.constant 0 : i32
    %c0_i32_0 = arith.constant 0 : i32
    %c0_i32_1 = arith.constant 0 : i32
    return %arg0, %c0_i32, %c0_i32_0 : i32, i32, i32
  }
}

</mosaic_0001>

<bundles_post_ra>
// kernel: tpu_custom_call.1
= control target key start
LH: loop header
LB: loop body
LE: loop exit
PB: predicated region body
PF: predicated region fallthrough
CT: control target
= control target key end

     0   :  { %vm88_vm0 = vcmask 261120   ;;  %s1830_s0 = inlined_call_operand.vmem [shape: f32[2,8,32], index: 0, kind: input, shape index: {}]   ;;  %s1831_s1 = inlined_call_operand.vmem [shape: f32[2,1,8], index: 1, kind: input, shape index: {}]   ;;  %s1832_s2 = inlined_call_operand.vmem [shape: f32[32,768], index: 2, kind: input, shape index: {}]   ;;  %s1833_s3 = inlined_call_operand.vmem [shape: f32[1,768], index: 3, kind: input, shape index: {}]   ;;  %s1834_s4 = inlined_call_operand.vmem [shape: f32[256,32], index: 4, kind: input, shape index: {}]   ;;  %s1835_s5 = inlined_call_operand.vmem [shape: f32[1,32], index: 5, kind: input, shape index: {}]   ;;  %s1836_s6 = inlined_call_operand.vmem [shape: f32[32,64], index: 6, kind: input, shape index: {}]   ;;  %s1837_s7 = inlined_call_operand.vmem [shape: f32[1,64], index: 7, kind: input, shape index: {}]   ;;  %s1838_s8 = inlined_call_operand.vmem [shape: f32[64,32], index: 8, kind: input, shape index: {}]   ;;  %s1839_s9 = inlined_call_operand.vmem [shape: f32[1,32], index: 9, kind: input, shape index: {}]   ;;  %s1840_s10 = inlined_call_operand.vmem [shape: f32[1,32], index: 10, kind: input, shape index: {}]   ;;  %s1841_s11 = inlined_call_operand.vmem [shape: f32[1,32], index: 11, kind: input, shape index: {}]   ;;  %s1842_s12 = inlined_call_operand.vmem [shape: f32[1,32], index: 12, kind: input, shape index: {}]   ;;  %s1843_s13 = inlined_call_operand.vmem [shape: f32[1,32], index: 13, kind: input, shape index: {}]   ;;  %s1844_s14 = inlined_call_operand.hbm [shape: f32[2,8,32], index: 14, kind: output, shape index: {}]  }
   0x1   :  { %v68_v0 = vld [vmem:[%s1832_s2 + $0x90] sm:$0xff]  ;;  %v62_v1 = vld [vmem:[%s1832_s2 + $0x60] sm:$0xff]  ;;  %v71_v3 = vld [vmem:[%s1832_s2 + $0xa8] sm:$0xff] }
   0x2   :  { %107 = vmatpush.msra.mxu2 %v68_v0  ;;  %v56_v2 = vld [vmem:[%s1832_s2 + $0x30] sm:$0xff]  ;;  %v65_v4 = vld [vmem:[%s1832_s2 + $0x78] sm:$0xff]  ;;  %v50_v5 = vld [vmem:[%s1832_s2] sm:$0xff]  ;;  %176 = vmatpush.msra.mxu3 %v71_v3 }
   0x3   :  { %v1430_v6 = vld [vmem:[%s1830_s0] sm:$0xff]  ;;  %v69_v7 = vld [vmem:[%s1832_s2 + $0x98] sm:$0xff]  ;;  %v59_v9 = vld [vmem:[%s1832_s2 + $0x48] sm:$0xff] }
   0x4   :  { %108 = vmatpush.msra.mxu2 %v62_v1  ;;  %v70_v8 = vld [vmem:[%s1832_s2 + $0xa0] sm:$0xff]  ;;  %1230 = vmatpush.msra.mxu1 %v69_v7  ;;  %v63_v10 = vld [vmem:[%s1832_s2 + $0x68] sm:$0xff]  ;;  %v64_v11 = vld [vmem:[%s1832_s2 + $0x70] sm:$0xff] }
   0x5   :  { %177 = vmatpush.msra.mxu3 %v65_v4  ;;  %v57_v12 = vld [vmem:[%s1832_s2 + $0x38] sm:$0xff]  ;;  %130 = vmatpush.msra.mxu0 %v69_v7 }
   0x6   :  { %109 = vmatpush.msra.mxu2 %v56_v2  ;;  %v53_v13 = vld [vmem:[%s1832_s2 + $0x18] sm:$0xff]  ;;  %1231 = vmatpush.msra.mxu1 %v63_v10 }
   0x7   :  { %178 = vmatpush.msra.mxu3 %v59_v9 }
   0x8   :  { %110 = vmatpush.msra.mxu2 %v50_v5 }
   0x9   :  { %1190 = vmatmul.msk.f32.vlgmr.msra.gmra.mxu2 %vm88_vm0, %v1430_v6 }
   0xa   :  { %19 = vsyncpa [#allocation3], 0  ;;  %153 = vmatpush.msrb.mxu2 %v70_v8  ;;  %1232 = vmatpush.msra.mxu1 %v57_v12  ;;  %v51_v14 = vld [vmem:[%s1832_s2 + $0x8] sm:$0xff]  ;;  %v58_v15 = vld [vmem:[%s1832_s2 + $0x40] sm:$0xff]  ;;  %vm283_vm1 = vcmask 523264   ;;  %vm476_vm2 = vcmask 64512  }
   0xb   :  { %179 = vmatpush.msra.mxu3 %v53_v13  ;;  %131 = vmatpush.msra.mxu0 %v63_v10  ;;  %v1466_v16 = vld [vmem:[%s1830_s0 + $0x8] sm:$0xff]  ;;  %v52_v17 = vld [vmem:[%s1832_s2 + $0x10] sm:$0xff]  ;;  %v66_v19 = vld [vmem:[%s1832_s2 + $0x80] sm:$0xff]  ;;  %s1332_s16 = smov 128   ;;  %s1333_s0 = smov 8  }
   0xc   :  { %154 = vmatpush.msrb.mxu2 %v64_v11  ;;  %1196 = vmatmul.msk.f32.vlgmr.msra.gmra.mxu3 %vm88_vm0, %v1430_v6  ;;  %v72_v18 = vld [vmem:[%s1832_s2 + $0xb0] sm:$0xff]  ;;  %v1495_v21 = vld [vmem:[%s1833_s3] sm:$0x3f]  ;;  %s1329_s3 = smov 64   ;;  %v73_v30 = vld [vmem:[%s1832_s2 + $0xb8] sm:$0xff] }
   0xd   :  { %1233 = vmatpush.msra.mxu1 %v51_v14  ;;  %132 = vmatpush.msra.mxu0 %v57_v12  ;;  %v60_v20 = vld [vmem:[%s1832_s2 + $0x50] sm:$0xff]  ;;  %v79_v23 = vperm.slane %v1495_v21, 3  ;;  %v54_v24 = vld [vmem:[%s1832_s2 + $0x20] sm:$0xff]  ;;  %v76_v27 = vperm.slane %v1495_v21, 0  ;;  %v67_v31 = vld [vmem:[%s1832_s2 + $0x88] sm:$0xff]  ;;  %v78_v32 = vperm.slane %v1495_v21, 2 }
   0xe   :  { %155 = vmatpush.msrb.mxu2 %v58_v15  ;;  %1193 = vmatmul.msk.f32.vlgmr.msra.gmra.mxu1 %vm88_vm0, %v1466_v16  ;;  %v61_v34 = vld [vmem:[%s1832_s2 + $0x58] sm:$0xff]  ;;  %v77_v35 = vperm.slane %v1495_v21, 1  ;;  %v55_v36 = vld [vmem:[%s1832_s2 + $0x28] sm:$0xff]  ;;  %v80_v47 = vperm.slane %v1495_v21, 4  ;;  %v81_v57 = vperm.slane %v1495_v21, 5 }
   0xf   :  { %133 = vmatpush.msra.mxu0 %v51_v14  ;;  %222 = vmatpush.msrb.mxu1 %v73_v30  ;;  %v273_v2 = vld [vmem:[%s1831_s1] sm:$0x1]  ;;  %v274_v4 = vld [vmem:[%s1831_s1 + $0x1] sm:$0x1] }
  0x10   :  { %156 = vmatpush.msrb.mxu2 %v52_v17  ;;  %1192 = vmatmul.msk.f32.vlgmr.msra.gmra.mxu0 %vm88_vm0, %v1430_v6  ;;  %v275_v7 = vmul.f32 -1e+09, %v273_v2  ;;  %v276_v8 = vmul.f32 -1e+09, %v274_v4 }
  0x11   :  { %1191 = vmatmul.msk.f32.gmra.mxu2 %vm88_vm0, %v1466_v16  ;;  %199 = vmatpush.msrb.mxu0 %v72_v18 }
  0x12   :  { %223 = vmatpush.msrb.mxu1 %v67_v31  ;;  %v279_v9 = vperm.slane %v275_v7, 0  ;;  %v280_v11 = vperm.slane %v276_v8, 0 }
  0x13   :  { %200 = vmatpush.msrb.mxu0 %v66_v19 }
  0x14   :  { %1197 = vmatmul.msk.f32.gmra.mxu3 %vm88_vm0, %v1466_v16  ;;  %224 = vmatpush.msrb.mxu1 %v61_v34 }
  0x15   :  { %201 = vmatpush.msrb.mxu0 %v60_v20 }
  0x16   :  { %225 = vmatpush.msrb.mxu1 %v55_v36 }
  0x17   :  { %202 = vmatpush.msrb.mxu0 %v54_v24  ;;  %1200 = vmatmul.msk.f32.vlgmr.msrb.gmra.mxu1 %vm88_vm0, %v1430_v6 }
  0x18   :  { %1198 = vmatmul.msk.f32.vlgmr.msrb.gmra.mxu0 %vm88_vm0, %v1430_v6 }
  0x19   :  { %1194 = vmatmul.msk.f32.vlgmr.msrb.gmra.mxu2 %vm88_vm0, %v1430_v6 }
  0x1f   :  { %1201 = vmatmul.msk.f32.gmra.mxu1 %vm88_vm0, %v1466_v16 }
  0x20   :  { %1199 = vmatmul.msk.f32.gmra.mxu0 %vm88_vm0, %v1466_v16 }
  0x21   :  { %1195 = vmatmul.msk.f32.gmra.mxu2 %vm88_vm0, %v1466_v16 }
  0x8b   :  { %v138_v45 = vpop.f32.mrf.mxu1 }
  0x8c   :  { %v112_v22 = vpop.f32.mrf.mxu2  ;;  %v139_v46 = vadd.f32 %v138_v45, %v77_v35 }
  0x8d   :  { %v135_v33 = vpop.f32.mrf.mxu0  ;;  %v113_v41 = vadd.f32 %v112_v22, %v76_v27 }
  0x8e   :  { %v136_v38 = vadd.f32 %v135_v33, %v77_v35 }
  0x8f   :  { %v181_v25 = vpop.f32.mrf.mxu3 }
  0x90   :  { %v182_v26 = vadd.f32 %v181_v25, %v79_v23 }
  0x92   :  { %1210 = vmatpush.xpose.msk.msra.mxu0 %vm283_vm1, %v182_v26 }
  0x94   :  { %v115_v28 = vpop.f32.mrf.mxu2  ;;  %v227_v58 = vpop.f32.mrf.mxu1 }
  0x95   :  { %v116_v29 = vadd.f32 %v115_v28, %v76_v27  ;;  %1211 = vmatmul.msk.f32.vlgmr.msra.gmra.mxu0 %vm283_vm1, %v136_v38  ;;  %v204_v48 = vpop.f32.mrf.mxu0  ;;  %v228_v59 = vadd.f32 %v227_v58, %v81_v57 }
  0x96   :  { %v205_v49 = vadd.f32 %v204_v48, %v80_v47 }
  0x97   :  { %237 = vrot.lane.b32.xlu2 %v116_v29, %s1329_s3  ;;  %v184_v40 = vpop.f32.mrf.mxu3 }
  0x98   :  { %v185_v42 = vadd.f32 %v184_v40, %v79_v23  ;;  %567 = vmatpush.msrb.mxu0 %v205_v49 }
  0x9a   :  { %1212 = vmatpush.xpose.msk.msra.mxu1 %vm283_vm1, %v185_v42  ;;  %659 = vmatpush.msra.mxu0 %v228_v59 }
  0x9c   :  { %v158_v37 = vpop.f32.mrf.mxu2  ;;  %v230_v63 = vpop.f32.mrf.mxu1 }
  0x9d   :  { %v159_v39 = vadd.f32 %v158_v37, %v78_v32  ;;  %1213 = vmatmul.msk.f32.vlgmr.msra.gmra.mxu1 %vm283_vm1, %v139_v46  ;;  %v207_v51 = vpop.f32.mrf.mxu0  ;;  %v231_v0 = vadd.f32 %v230_v63, %v81_v57 }
  0x9e   :  { %v208_v52 = vadd.f32 %v207_v51, %v80_v47 }
  0x9f   :  { %247 = vrot.lane.b32.xlu0 %v159_v39, %s1329_s3  ;;  %1202 = vmatpush.xpose.msk.msra.mxu2 %vm283_vm1, %v159_v39 }
  0xa0   :  { %241 = vrot.lane.b32.xlu2 %v136_v38, %s1329_s3  ;;  %v1239_v54 = vpack.i.bf16 %v208_v52, %v205_v49  ;;  %590 = vmatpush.msrb.mxu1 %v208_v52 }
  0xa2   :  { %1203 = vmatmul.msk.f32.vlgmr.msra.gmra.mxu2 %vm283_vm1, %v113_v41  ;;  %682 = vmatpush.msra.mxu1 %v231_v0 }
  0xa4   :  { %v161_v43 = vpop.f32.mrf.mxu2 }
  0xa5   :  { %v162_v44 = vadd.f32 %v161_v43, %v78_v32 }
  0xa7   :  { %249 = vrot.lane.b32.xlu1 %v162_v44, %s1329_s3  ;;  %1204 = vmatpush.xpose.msk.msrb.mxu3 %vm283_vm1, %v162_v44 }
  0xa8   :  { %235 = vrot.lane.b32.xlu0 %v113_v41, %s1329_s3 }
  0xaa   :  { %1205 = vmatmul.msk.f32.vlgmr.msrb.gmra.mxu3 %vm283_vm1, %v116_v29 }
  0xaf   :  { %253 = vrot.lane.b32.xlu1 %v182_v26, %s1329_s3 }
  0xb0   :  { %255 = vrot.lane.b32.xlu0 %v185_v42, %s1329_s3 }
  0xb7   :  { %243 = vrot.lane.b32.xlu1 %v139_v46, %s1329_s3 }
  0xf1   :  { %v238_v55 = vpop.permute.xlu2 %237 }
  0xfa   :  { %v242_v61 = vpop.permute.xlu2 %241 }
 0x111   :  { %v248_v50 = vpop.permute.xlu0 %247 }
 0x112   :  { %1206 = vmatpush.xpose.msk.msrb.mxu2 %vm283_vm1, %v248_v50  ;;  %v401_v28 = vpop.f32.mrf.mxu0 }
 0x113   :  { %v1566_v30 = vadd.f32 %v401_v28, %v279_v9 }
 0x115   :  { %v489_v32 = vsel %vm476_vm2, %v1566_v30, -inf }
 0x119   :  { %v250_v53 = vpop.permute.xlu1 %249 }
 0x11a   :  { %v236_v56 = vpop.permute.xlu0 %235  ;;  %1208 = vmatpush.xpose.msk.msra.mxu3 %vm283_vm1, %v250_v53  ;;  %v425_v26 = vpop.f32.mrf.mxu1 }
 0x11b   :  { %1207 = vmatmul.msk.f32.vlgmr.msrb.gmra.mxu2 %vm283_vm1, %v236_v56  ;;  %v426_v27 = vadd.f32 %v425_v26, %v280_v11 }
 0x11d   :  { %1209 = vmatmul.msk.f32.vlgmr.msra.gmra.mxu3 %vm283_vm1, %v238_v55  ;;  %v492_v31 = vsel %vm476_vm2, %v426_v27, -inf }
 0x121   :  { %v254_v60 = vpop.permute.xlu1 %253 }
 0x122   :  { %1214 = vmatpush.xpose.msk.msra.mxu2 %vm283_vm1, %v254_v60  ;;  %v256_v62 = vpop.permute.xlu0 %255 }
 0x123   :  { %1216 = vmatpush.xpose.msk.msrb.mxu3 %vm283_vm1, %v256_v62 }
 0x125   :  { %1215 = vmatmul.msk.f32.vlgmr.msra.gmra.mxu2 %vm283_vm1, %v242_v61  ;;  %v305_v3 = vpop.f32.mrf.mxu2 }
 0x126   :  { %v306_v24 = vadd.f32 %v305_v3, %v279_v9 }
 0x128   :  { %v477_v25 = vsel %vm476_vm2, %v306_v24, -inf }
 0x129   :  { %v244_v1 = vpop.permute.xlu1 %243 }
 0x12a   :  { %1217 = vmatmul.msk.f32.vlgmr.msrb.gmra.mxu3 %vm283_vm1, %v244_v1 }
 0x12d   :  { %v329_v5 = vpop.f32.mrf.mxu3 }
 0x12e   :  { %v1564_v29 = vadd.f32 %v329_v5, %v280_v11 }
 0x130   :  { %v480_v33 = vsel %vm476_vm2, %v1564_v29, -inf }
 0x19e   :  { %v353_v10 = vpop.f32.mrf.mxu2 }
 0x19f   :  { %v354_v12 = vadd.f32 %v353_v10, %v279_v9 }
 0x1a0   :  { %v377_v13 = vpop.f32.mrf.mxu3 }
 0x1a1   :  { %v378_v14 = vadd.f32 %v377_v13, %v280_v11  ;;  %v483_v15 = vsel %vm476_vm2, %v354_v12, -inf }
 0x1a2   :  { %484 = vmax.xlane.f32.xlu2 %v483_v15 }
 0x1a3   :  { %v486_v17 = vsel %vm476_vm2, %v378_v14, -inf }
 0x1a4   :  { %487 = vmax.xlane.f32.xlu0 %v486_v17 }
 0x1a8   :  { %v449_v18 = vpop.f32.mrf.mxu2 }
 0x1a9   :  { %v450_v19 = vadd.f32 %v449_v18, %v279_v9 }
 0x1ab   :  { %v495_v20 = vsel %vm476_vm2, %v450_v19, -inf }
 0x1ac   :  { %496 = vmax.xlane.f32.xlu1 %v495_v20 }
 0x1ad   :  { %v473_v21 = vpop.f32.mrf.mxu3 }
 0x1ae   :  { %v474_v22 = vadd.f32 %v473_v21, %v280_v11 }
 0x1b0   :  { %v498_v23 = vsel %vm476_vm2, %v474_v22, -inf }
 0x1b1   :  { %499 = vmax.xlane.f32.xlu0 %v498_v23 }
 0x1ba   :  { %1240 = vrot.lane.b32.xlu2 %v1239_v54, %s1329_s3 }
 0x1c5   :  { %269 = vrot.lane.b32.xlu0 %v231_v0, %s1329_s3  ;;  %267 = vrot.lane.b32.xlu1 %v228_v59, %s1329_s3 }
 0x1e3   :  { %478 = vmax.xlane.f32.xlu2 %v477_v25 }
 0x1eb   :  { %493 = vmax.xlane.f32.xlu2 %v492_v31 }
 0x1ef   :  { %490 = vmax.xlane.f32.xlu0 %v489_v32  ;;  %481 = vmax.xlane.f32.xlu1 %v480_v33 }
 0x215   :  { %v485_v34 = vpop.xlane.xlu2 %484 }
 0x216   :  { %v503_v35 = vsub.f32 %v354_v12, %v485_v34 }
 0x217   :  { %v488_v36 = vpop.xlane.xlu0 %487 }
 0x218   :  { %v513_v37 = vmul.f32 1.442695, %v503_v35  ;;  %v504_v38 = vsub.f32 %v378_v14, %v488_v36 }
 0x21a   :  { %1261 = vpow2.f32 %v513_v37  ;;  %v515_v39 = vmul.f32 1.442695, %v504_v38 }
 0x21c   :  { %1263 = vpow2.f32 %v515_v39 }
 0x21d   :  { %v1241_v40 = vpop.permute.xlu2 %1240 }
 0x21e   :  { %v1243_v41 = vunpack.i.h.bf16 %v1241_v40  ;;  %v1242_v42 = vunpack.i.l.bf16 %v1241_v40 }
 0x21f   :  { %v497_v43 = vpop.xlane.xlu1 %496 }
 0x220   :  { %v1262_v44 = vpop.eup %1261  ;;  %v507_v45 = vsub.f32 %v450_v19, %v497_v43  ;;  %613 = vmatpush.msrb.mxu2 %v1242_v42  ;;  %636 = vmatpush.msra.mxu3 %v1243_v41 }
 0x221   :  { %1220 = vmatmul.msk.f32.vlgmr.msrb.gmra.mxu2 %vm476_vm2, %v1262_v44  ;;  %v531_v46 = vsel %vm476_vm2, %v1262_v44, 0.0  ;;  %v873_v44 = vld [vmem:[%s1834_s4] sm:$0xff] }
 0x222   :  { %v1264_v47 = vpop.eup %1263  ;;  %v521_v48 = vmul.f32 1.442695, %v507_v45  ;;  %532 = vadd.xlane.f32.xlu2 %v531_v46 }
 0x223   :  { %1221 = vmatmul.msk.f32.vlgmr.msra.gmra.mxu3 %vm476_vm2, %v1264_v47  ;;  %v534_v49 = vsel %vm476_vm2, %v1264_v47, 0.0 }
 0x224   :  { %1265 = vpow2.f32 %v521_v48  ;;  %535 = vadd.xlane.f32.xlu0 %v534_v49  ;;  %v500_v50 = vpop.xlane.xlu0 %499 }
 0x225   :  { %v508_v51 = vsub.f32 %v474_v22, %v500_v50 }
 0x227   :  { %v523_v52 = vmul.f32 1.442695, %v508_v51 }
 0x229   :  { %1267 = vpow2.f32 %v523_v52 }
 0x22a   :  { %v1266_v53 = vpop.eup %1265 }
 0x22b   :  { %v543_v54 = vsel %vm476_vm2, %v1266_v53, 0.0 }
 0x22c   :  { %544 = vadd.xlane.f32.xlu1 %v543_v54 }
 0x22f   :  { %v1268_v55 = vpop.eup %1267 }
 0x230   :  { %v546_v56 = vsel %vm476_vm2, %v1268_v55, 0.0 }
 0x231   :  { %547 = vadd.xlane.f32.xlu2 %v546_v56 }
 0x237   :  { %v270_v57 = vpop.permute.xlu0 %269  ;;  %v268_v58 = vpop.permute.xlu1 %267 }
 0x238   :  { %705 = vmatpush.msra.mxu2 %v268_v58  ;;  %728 = vmatpush.msrb.mxu3 %v270_v57 }
 0x239   :  { %1224 = vmatmul.msk.f32.vlgmr.msra.gmra.mxu2 %vm476_vm2, %v1266_v53  ;;  %1225 = vmatmul.msk.f32.vlgmr.msrb.gmra.mxu3 %vm476_vm2, %v1268_v55 }
 0x256   :  { %v479_v59 = vpop.xlane.xlu2 %478 }
 0x257   :  { %v501_v60 = vsub.f32 %v306_v24, %v479_v59 }
 0x259   :  { %v509_v61 = vmul.f32 1.442695, %v501_v60 }
 0x25b   :  { %1269 = vpow2.f32 %v509_v61 }
 0x25e   :  { %v494_v62 = vpop.xlane.xlu2 %493 }
 0x25f   :  { %v506_v63 = vsub.f32 %v426_v27, %v494_v62 }
 0x261   :  { %v1270_v0 = vpop.eup %1269  ;;  %v519_v1 = vmul.f32 1.442695, %v506_v63 }
 0x262   :  { %1218 = vmatmul.msk.f32.vlgmr.msrb.gmra.mxu0 %vm476_vm2, %v1270_v0  ;;  %v491_v2 = vpop.xlane.xlu0 %490  ;;  %v482_v3 = vpop.xlane.xlu1 %481  ;;  %v525_v4 = vsel %vm476_vm2, %v1270_v0, 0.0 }
 0x263   :  { %1271 = vpow2.f32 %v519_v1  ;;  %v505_v5 = vsub.f32 %v1566_v30, %v491_v2  ;;  %v502_v7 = vsub.f32 %v1564_v29, %v482_v3  ;;  %526 = vadd.xlane.f32.xlu1 %v525_v4 }
 0x265   :  { %v517_v8 = vmul.f32 1.442695, %v505_v5  ;;  %v511_v9 = vmul.f32 1.442695, %v502_v7 }
 0x267   :  { %1273 = vpow2.f32 %v517_v8 }
 0x268   :  { %1275 = vpow2.f32 %v511_v9 }
 0x269   :  { %v1272_v10 = vpop.eup %1271 }
 0x26a   :  { %v540_v11 = vsel %vm476_vm2, %v1272_v10, 0.0 }
 0x26b   :  { %541 = vadd.xlane.f32.xlu1 %v540_v11  ;;  %v888_v11 = vld [vmem:[%s1834_s4 + $0x78] sm:$0xff] }
 0x26c   :  { %909 = vmatpush.msrb.mxu0 %v888_v11 }
 0x26d   :  { %v1274_v12 = vpop.eup %1273 }
 0x26e   :  { %v1276_v13 = vpop.eup %1275  ;;  %1222 = vmatmul.msk.f32.vlgmr.msra.gmra.mxu0 %vm476_vm2, %v1274_v12  ;;  %v537_v14 = vsel %vm476_vm2, %v1274_v12, 0.0  ;;  %v904_v12 = vld [vmem:[%s1834_s4 + $0xf8] sm:$0xff] }
 0x26f   :  { %1219 = vmatmul.msk.f32.vlgmr.msrb.gmra.mxu1 %vm476_vm2, %v1276_v13  ;;  %538 = vadd.xlane.f32.xlu0 %v537_v14  ;;  %v528_v15 = vsel %vm476_vm2, %v1276_v13, 0.0  ;;  %v887_v13 = vld [vmem:[%s1834_s4 + $0x70] sm:$0xff] }
 0x270   :  { %529 = vadd.xlane.f32.xlu2 %v528_v15  ;;  %932 = vmatpush.msrb.mxu1 %v904_v12  ;;  %v903_v14 = vld [vmem:[%s1834_s4 + $0xf0] sm:$0xff]  ;;  %v886_v15 = vld [vmem:[%s1834_s4 + $0x68] sm:$0xff] }
 0x271   :  { %910 = vmatpush.msrb.mxu0 %v887_v13 }
 0x272   :  { %933 = vmatpush.msrb.mxu1 %v903_v14 }
 0x273   :  { %911 = vmatpush.msrb.mxu0 %v886_v15 }
 0x277   :  { %1223 = vmatmul.msk.f32.vlgmr.msra.gmra.mxu1 %vm476_vm2, %v1272_v10 }
 0x295   :  { %v533_v17 = vpop.xlane.xlu2 %532 }
 0x296   :  { %1277 = vrcp.f32 %v533_v17  ;;  %vm766_vm3 = vweird.f32 %v533_v17  ;;  %v770_v38 = vand.u32 2147483647, %v533_v17  ;;  %v772_v41 = vand.u32 2147483648, %v533_v17 }
 0x297   :  { %v536_v18 = vpop.xlane.xlu0 %535 }
 0x298   :  { %1279 = vrcp.f32 %v536_v18  ;;  %vm780_vm6 = vweird.f32 %v536_v18  ;;  %v786_v43 = vand.u32 2147483648, %v536_v18  ;;  %v784_v45 = vand.u32 2147483647, %v536_v18 }
 0x299   :  { %v773_v56 = vor.u32 1.1754944e-38, %v772_v41  ;;  %vm771_vm15 = vcmp.eq.f32.partialorder %v770_v38, 8.507059e+37  ;;  %v875_v38 = vld [vmem:[%s1834_s4 + $0x10] sm:$0xff] }
 0x29a   :  { %v787_v57 = vor.u32 1.1754944e-38, %v786_v43  ;;  %vm785_vm2 = vcmp.eq.f32.partialorder %v784_v45, 8.507059e+37  ;;  %v890_v43 = vld [vmem:[%s1834_s4 + $0x88] sm:$0xff]  ;;  %v889_v45 = vld [vmem:[%s1834_s4 + $0x80] sm:$0xff] }
 0x29c   :  { %v1278_v20 = vpop.eup %1277 }
 0x29d   :  { %v762_v24 = vmul.f32 %v1278_v20, %v533_v17  ;;  %vm767_vm4 = vweird.f32 %v1278_v20  ;;  %v902_v17 = vld [vmem:[%s1834_s4 + $0xe8] sm:$0xff] }
 0x29e   :  { %v1280_v21 = vpop.eup %1279  ;;  %vm1591_vm8 = vmor %vm766_vm3, %vm767_vm4  ;;  %934 = vmatpush.msrb.mxu1 %v902_v17 }
 0x29f   :  { %v545_v19 = vpop.xlane.xlu1 %544  ;;  %v776_v25 = vmul.f32 %v1280_v21, %v536_v18  ;;  %v763_v28 = vsub.f32 1.0, %v762_v24  ;;  %vm781_vm5 = vweird.f32 %v1280_v21  ;;  %v885_v18 = vld [vmem:[%s1834_s4 + $0x60] sm:$0xff]  ;;  %v882_v24 = vld [vmem:[%s1834_s4 + $0x48] sm:$0xff] }
 0x2a0   :  { %1281 = vrcp.f32 %v545_v19  ;;  %vm1595_vm10 = vmor %vm780_vm6, %vm781_vm5  ;;  %vm822_vm11 = vweird.f32 %v545_v19  ;;  %v826_v49 = vand.u32 2147483647, %v545_v19  ;;  %v828_v50 = vand.u32 2147483648, %v545_v19  ;;  %912 = vmatpush.msrb.mxu0 %v885_v18 }
 0x2a1   :  { %v777_v29 = vsub.f32 1.0, %v776_v25  ;;  %v764_v33 = vmul.f32 %v1278_v20, %v763_v28  ;;  %v898_v25 = vld [vmem:[%s1834_s4 + $0xc8] sm:$0xff]  ;;  %v880_v28 = vld [vmem:[%s1834_s4 + $0x38] sm:$0xff] }
 0x2a2   :  { %v829_v62 = vor.u32 1.1754944e-38, %v828_v50  ;;  %vm827_vm3 = vcmp.eq.f32.partialorder %v826_v49, 8.507059e+37 }
 0x2a3   :  { %v778_v34 = vmul.f32 %v1280_v21, %v777_v29  ;;  %v765_v37 = vadd.f32 %v1278_v20, %v764_v33  ;;  %v896_v29 = vld [vmem:[%s1834_s4 + $0xb8] sm:$0xff]  ;;  %v894_v33 = vld [vmem:[%s1834_s4 + $0xa8] sm:$0xff] }
 0x2a4   :  { %v548_v22 = vpop.xlane.xlu2 %547  ;;  %v615_v40 = vpop.f32.mrf.mxu2 }
 0x2a5   :  { %1283 = vrcp.f32 %v548_v22  ;;  %v779_v39 = vadd.f32 %v1280_v21, %v778_v34  ;;  %v842_v51 = vand.u32 2147483648, %v548_v22  ;;  %v769_v52 = vsel %vm1591_vm8, %v1278_v20, %v765_v37  ;;  %v884_v20 = vld [vmem:[%s1834_s4 + $0x58] sm:$0xff]  ;;  %v877_v34 = vld [vmem:[%s1834_s4 + $0x20] sm:$0xff] }
 0x2a6   :  { %v1282_v23 = vpop.eup %1281  ;;  %v638_v42 = vpop.f32.mrf.mxu3  ;;  %vm836_vm13 = vweird.f32 %v548_v22  ;;  %v840_v55 = vand.u32 2147483647, %v548_v22  ;;  %v774_v60 = vsel %vm771_vm15, %v773_v56, %v769_v52  ;;  %913 = vmatpush.msrb.mxu0 %v884_v20  ;;  %v892_v37 = vld [vmem:[%s1834_s4 + $0x98] sm:$0xff] }
 0x2a7   :  { %v818_v26 = vmul.f32 %v1282_v23, %v545_v19  ;;  %vm823_vm7 = vweird.f32 %v1282_v23  ;;  %v783_v53 = vsel %vm1595_vm10, %v1280_v21, %v779_v39  ;;  %v843_v63 = vor.u32 1.1754944e-38, %v842_v51  ;;  %v901_v19 = vld [vmem:[%s1834_s4 + $0xe0] sm:$0xff]  ;;  %v900_v21 = vld [vmem:[%s1834_s4 + $0xd8] sm:$0xff]  ;;  %v891_v39 = vld [vmem:[%s1834_s4 + $0x90] sm:$0xff] }
 0x2a8   :  { %vm1603_vm12 = vmor %vm822_vm11, %vm823_vm7  ;;  %v788_v61 = vsel %vm785_vm2, %v787_v57, %v783_v53  ;;  %vm841_vm4 = vcmp.eq.f32.partialorder %v840_v55, 8.507059e+37  ;;  %v847_v4 = vmul.f32 %v774_v60, %v615_v40  ;;  %935 = vmatpush.msrb.mxu1 %v901_v19 }
 0x2a9   :  { %v819_v31 = vsub.f32 1.0, %v818_v26  ;;  %v848_v5 = vmul.f32 %v788_v61, %v638_v42  ;;  %v881_v26 = vld [vmem:[%s1834_s4 + $0x40] sm:$0xff]  ;;  %v874_v42 = vld [vmem:[%s1834_s4 + $0x8] sm:$0xff] }
 0x2aa   :  { %936 = vmatpush.msrb.mxu1 %v900_v21 }
 0x2ab   :  { %v1284_v27 = vpop.eup %1283  ;;  %v820_v35 = vmul.f32 %v1282_v23, %v819_v31  ;;  %v895_v31 = vld [vmem:[%s1834_s4 + $0xb0] sm:$0xff] }
 0x2ac   :  { %v832_v30 = vmul.f32 %v1284_v27, %v548_v22  ;;  %vm837_vm9 = vweird.f32 %v1284_v27  ;;  %v883_v22 = vld [vmem:[%s1834_s4 + $0x50] sm:$0xff] }
 0x2ad   :  { %v821_v46 = vadd.f32 %v1282_v23, %v820_v35  ;;  %vm838_vm14 = vmor %vm836_vm13, %vm837_vm9  ;;  %914 = vmatpush.msrb.mxu0 %v883_v22  ;;  %v893_v35 = vld [vmem:[%s1834_s4 + $0xa0] sm:$0xff] }
 0x2ae   :  { %v833_v32 = vsub.f32 1.0, %v832_v30  ;;  %v879_v30 = vld [vmem:[%s1834_s4 + $0x30] sm:$0xff] }
 0x2af   :  { %v825_v58 = vsel %vm1603_vm12, %v1282_v23, %v821_v46  ;;  %v899_v23 = vld [vmem:[%s1834_s4 + $0xd0] sm:$0xff]  ;;  %915 = vmatpush.msrb.mxu0 %v882_v24 }
 0x2b0   :  { %v834_v36 = vmul.f32 %v1284_v27, %v833_v32  ;;  %v830_v1 = vsel %vm827_vm3, %v829_v62, %v825_v58  ;;  %937 = vmatpush.msrb.mxu1 %v899_v23  ;;  %v878_v32 = vld [vmem:[%s1834_s4 + $0x28] sm:$0xff] }
 0x2b1   :  { %916 = vmatpush.msrb.mxu0 %v881_v26 }
 0x2b2   :  { %v835_v47 = vadd.f32 %v1284_v27, %v834_v36  ;;  %938 = vmatpush.msrb.mxu1 %v898_v25  ;;  %v876_v36 = vld [vmem:[%s1834_s4 + $0x18] sm:$0xff] }
 0x2b3   :  { %917 = vmatpush.msrb.mxu0 %v880_v28 }
 0x2b4   :  { %v839_v59 = vsel %vm838_vm14, %v1284_v27, %v835_v47  ;;  %v897_v27 = vld [vmem:[%s1834_s4 + $0xc0] sm:$0xff] }
 0x2b5   :  { %v844_v3 = vsel %vm841_vm4, %v843_v63, %v839_v59  ;;  %939 = vmatpush.msrb.mxu1 %v897_v27  ;;  %918 = vmatpush.msrb.mxu0 %v879_v30 }
 0x2b7   :  { %940 = vmatpush.msrb.mxu1 %v896_v29  ;;  %919 = vmatpush.msrb.mxu0 %v878_v32 }
 0x2b9   :  { %941 = vmatpush.msrb.mxu1 %v895_v31  ;;  %920 = vmatpush.msrb.mxu0 %v877_v34 }
 0x2bb   :  { %942 = vmatpush.msrb.mxu1 %v894_v33  ;;  %921 = vmatpush.msrb.mxu0 %v876_v36 }
 0x2bc   :  { %v707_v0 = vpop.f32.mrf.mxu2  ;;  %v730_v2 = vpop.f32.mrf.mxu3 }
 0x2bd   :  { %v851_v7 = vmul.f32 %v830_v1, %v707_v0  ;;  %v852_v8 = vmul.f32 %v844_v3, %v730_v2  ;;  %943 = vmatpush.msrb.mxu1 %v893_v35  ;;  %922 = vmatpush.msrb.mxu0 %v875_v38 }
 0x2bf   :  { %v1244_v9 = vpack.i.bf16 %v851_v7, %v847_v4  ;;  %v1249_v10 = vpack.i.bf16 %v852_v8, %v848_v5  ;;  %944 = vmatpush.msrb.mxu1 %v892_v37  ;;  %923 = vmatpush.msrb.mxu0 %v874_v42 }
 0x2c1   :  { %1245 = vrot.lane.b32.xlu0 %v1244_v9, %s1329_s3  ;;  %1250 = vrot.lane.b32.xlu2 %v1249_v10, %s1329_s3 }
 0x2c2   :  { %945 = vmatpush.msrb.mxu1 %v891_v39  ;;  %924 = vmatpush.msrb.mxu0 %v873_v44  ;;  %v1254_v44 = vld [vmem:[%s1835_s5] ss:$0 sm:$0xff] }
 0x2c4   :  { %946 = vmatpush.msrb.mxu1 %v890_v43 }
 0x2c6   :  { %947 = vmatpush.msrb.mxu1 %v889_v45 }
 0x2d6   :  { %v527_v40 = vpop.xlane.xlu1 %526 }
 0x2d7   :  { %1285 = vrcp.f32 %v527_v40  ;;  %v744_v61 = vand.u32 2147483648, %v527_v40  ;;  %vm738_vm7 = vweird.f32 %v527_v40  ;;  %v742_v1 = vand.u32 2147483647, %v527_v40 }
 0x2d9   :  { %v745_v7 = vor.u32 1.1754944e-38, %v744_v61  ;;  %vm743_vm11 = vcmp.eq.f32.partialorder %v742_v1, 8.507059e+37 }
 0x2dd   :  { %v1286_v46 = vpop.eup %1285 }
 0x2de   :  { %v1709_v49 = vpop.xlane.xlu1 %541  ;;  %v734_v50 = vmul.f32 %v1286_v46, %v527_v40  ;;  %vm739_vm5 = vweird.f32 %v1286_v46 }
 0x2df   :  { %v569_v0 = vpop.f32.mrf.mxu0  ;;  %vm740_vm8 = vmor %vm738_vm7, %vm739_vm5  ;;  %vm808_vm3 = vweird.f32 %v1709_v49  ;;  %v814_v26 = vand.u32 2147483648, %v1709_v49  ;;  %v812_v28 = vand.u32 2147483647, %v1709_v49 }
 0x2e0   :  { %v735_v52 = vsub.f32 1.0, %v734_v50 }
 0x2e1   :  { %v815_v36 = vor.u32 1.1754944e-38, %v814_v26  ;;  %v1069_v26 = vld [vmem:[%s1838_s8 + $0x20] sm:$0xff] }
 0x2e2   :  { %v539_v41 = vpop.xlane.xlu0 %538  ;;  %v736_v56 = vmul.f32 %v1286_v46, %v735_v52 }
 0x2e3   :  { %1287 = vrcp.f32 %v539_v41  ;;  %v1707_v47 = vpop.xlane.xlu2 %529  ;;  %v800_v2 = vand.u32 2147483648, %v539_v41  ;;  %vm794_vm9 = vweird.f32 %v539_v41  ;;  %v798_v4 = vand.u32 2147483647, %v539_v41 }
 0x2e4   :  { %1289 = vrcp.f32 %v1707_v47  ;;  %v737_v60 = vadd.f32 %v1286_v46, %v736_v56  ;;  %vm752_vm13 = vweird.f32 %v1707_v47  ;;  %v756_v18 = vand.u32 2147483647, %v1707_v47 }
 0x2e5   :  { %1291 = vrcp.f32 %v1709_v49  ;;  %v801_v11 = vor.u32 1.1754944e-38, %v800_v2  ;;  %vm799_vm12 = vcmp.eq.f32.partialorder %v798_v4, 8.507059e+37  ;;  %v758_v19 = vand.u32 2147483648, %v1707_v47 }
 0x2e6   :  { %v741_v5 = vsel %vm740_vm8, %v1286_v46, %v737_v60  ;;  %vm757_vm5 = vcmp.eq.f32.partialorder %v756_v18, 8.507059e+37  ;;  %v1330_v60 = vmov 32.0  }
 0x2e7   :  { %v746_v12 = vsel %vm743_vm11, %v745_v7, %v741_v5  ;;  %v759_v31 = vor.u32 1.1754944e-38, %v758_v19  ;;  %1293 = vrcp.f32 %v1330_v60  ;;  %v1028_v5 = vld [vmem:[%s1836_s6 + $0x10] sm:$0xff]  ;;  %v1027_v7 = vld [vmem:[%s1836_s6 + $0x8] sm:$0xff] }
 0x2e8   :  { %v845_v17 = vmul.f32 %v746_v12, %v569_v0 }
 0x2e9   :  { %v1288_v48 = vpop.eup %1287 }
 0x2ea   :  { %v790_v51 = vmul.f32 %v1288_v48, %v539_v41  ;;  %v1290_v54 = vpop.eup %1289  ;;  %vm795_vm6 = vweird.f32 %v1288_v48 }
 0x2eb   :  { %v1713_v55 = vpop.eup %1291  ;;  %v748_v57 = vmul.f32 %v1290_v54, %v1707_v47  ;;  %vm796_vm10 = vmor %vm794_vm9, %vm795_vm6  ;;  %vm753_vm14 = vweird.f32 %v1290_v54  ;;  %v661_v20 = vpop.f32.mrf.mxu0  ;;  %vm813_vm6 = vcmp.eq.f32.partialorder %v812_v28, 8.507059e+37 }
 0x2ec   :  { %v791_v53 = vsub.f32 1.0, %v790_v51  ;;  %v804_v59 = vmul.f32 %v1713_v55, %v1709_v49  ;;  %v592_v10 = vpop.f32.mrf.mxu1  ;;  %vm809_vm15 = vweird.f32 %v1713_v55  ;;  %vm754_vm2 = vmor %vm752_vm13, %vm753_vm14 }
 0x2ed   :  { %v749_v62 = vsub.f32 1.0, %v748_v57  ;;  %vm810_vm4 = vmor %vm808_vm3, %vm809_vm15  ;;  %v1294_v61 = vpop.eup %1293 }
 0x2ee   :  { %v792_v58 = vmul.f32 %v1288_v48, %v791_v53  ;;  %v805_v3 = vsub.f32 1.0, %v804_v59  ;;  %vm970_vm7 = vweird.f32 %v1294_v61 }
 0x2ef   :  { %v750_v8 = vmul.f32 %v1290_v54, %v749_v62  ;;  %v966_v62 = vmul.f32 32.0, %v1294_v61 }
 0x2f0   :  { %v793_v63 = vadd.f32 %v1288_v48, %v792_v58  ;;  %v806_v13 = vmul.f32 %v1713_v55, %v805_v3  ;;  %v1029_v3 = vld [vmem:[%s1836_s6 + $0x18] sm:$0xff] }
 0x2f1   :  { %v751_v15 = vadd.f32 %v1290_v54, %v750_v8  ;;  %1052 = vmatpush.msrb.mxu2 %v1029_v3 }
 0x2f2   :  { %v797_v9 = vsel %vm796_vm10, %v1288_v48, %v793_v63  ;;  %v807_v23 = vadd.f32 %v1713_v55, %v806_v13  ;;  %v967_v63 = vsub.f32 1.0, %v966_v62  ;;  %v1258_v62 = vld [vmem:[%s1839_s9] ss:$0 sm:$0xff] }
 0x2f3   :  { %v802_v14 = vsel %vm799_vm12, %v801_v11, %v797_v9  ;;  %v755_v27 = vsel %vm754_vm2, %v1290_v54, %v751_v15  ;;  %1053 = vmatpush.msrb.mxu2 %v1028_v5  ;;  %v1026_v9 = vld [vmem:[%s1836_s6] sm:$0xff]  ;;  %s1178_s6 = sshll.u32 %s1844_s14, 4  ;;  %s1179_s6 = int_to_ptr.hbm [resolvable:$true] %s1178_s6 }
 0x2f4   :  { %v849_v22 = vmul.f32 %v802_v14, %v661_v20  ;;  %v811_v33 = vsel %vm810_vm4, %v1713_v55, %v807_v23  ;;  %v760_v34 = vsel %vm757_vm5, %v759_v31, %v755_v27  ;;  %v684_v35 = vpop.f32.mrf.mxu1 }
 0x2f5   :  { %v816_v39 = vsel %vm813_vm6, %v815_v36, %v811_v33  ;;  %v846_v40 = vmul.f32 %v760_v34, %v592_v10  ;;  %1054 = vmatpush.msrb.mxu2 %v1027_v7 }
 0x2f6   :  { %v850_v41 = vmul.f32 %v816_v39, %v684_v35 }
 0x2f7   :  { %1055 = vmatpush.msrb.mxu2 %v1026_v9 }
 0x31b   :  { %v1251_v32 = vpop.permute.xlu2 %1250 }
 0x31c   :  { %v1253_v37 = vunpack.i.h.bf16 %v1251_v32  ;;  %v1252_v38 = vunpack.i.l.bf16 %v1251_v32 }
 0x31e   :  { %v870_v42 = vsel %vm283_vm1, %v846_v40, %v1252_v38  ;;  %v872_v43 = vsel %vm283_vm1, %v850_v41, %v1253_v37  ;;  %v1255_v38 = vld [vmem:[%s1840_s10] ss:$0 sm:$0xff] }
 0x333   :  { %v1246_v21 = vpop.permute.xlu0 %1245 }
 0x334   :  { %v1248_v24 = vunpack.i.h.bf16 %v1246_v21  ;;  %v1247_v25 = vunpack.i.l.bf16 %v1246_v21  ;;  %v1072_v21 = vld [vmem:[%s1838_s8 + $0x38] sm:$0xff] }
 0x335   :  { %1091 = vmatpush.msra.mxu3 %v1072_v21 }
 0x336   :  { %v869_v29 = vsel %vm283_vm1, %v845_v17, %v1247_v25  ;;  %v871_v30 = vsel %vm283_vm1, %v849_v22, %v1248_v24  ;;  %v1071_v22 = vld [vmem:[%s1838_s8 + $0x30] sm:$0xff]  ;;  %v1070_v24 = vld [vmem:[%s1838_s8 + $0x28] sm:$0xff] }
 0x337   :  { %925 = vmatmul.f32.vlgmr.msrb.gmra.mxu0 %v869_v29  ;;  %948 = vmatmul.f32.vlgmr.msrb.gmra.mxu1 %v871_v30  ;;  %v1068_v29 = vld [vmem:[%s1838_s8 + $0x18] sm:$0xff] }
 0x338   :  { %1092 = vmatpush.msra.mxu3 %v1071_v22 }
 0x33a   :  { %1093 = vmatpush.msra.mxu3 %v1070_v24 }
 0x33c   :  { %1094 = vmatpush.msra.mxu3 %v1069_v26 }
 0x33e   :  { %1095 = vmatpush.msra.mxu3 %v1068_v29 }
 0x33f   :  { %928 = vmatmul.f32.gmra.mxu0 %v870_v42  ;;  %951 = vmatmul.f32.gmra.mxu1 %v872_v43  ;;  %v1256_v42 = vld [vmem:[%s1841_s11] ss:$0 sm:$0xff] }
 0x3b4   :  { %v926_v45 = vpop.f32.mrf.mxu0  ;;  %v949_v46 = vpop.f32.mrf.mxu1 }
 0x3b5   :  { %v927_v47 = vadd.f32 %v1254_v44, %v926_v45 }
 0x3b7   :  { %v950_v48 = vadd.f32 %v949_v46, %v927_v47 }
 0x3b9   :  { %v1736_v49 = vadd.f32 %v950_v48, %v1430_v6 }
 0x3bb   :  { %v959_v50 = vsel %vm88_vm0, %v1736_v49, 0.0  ;;  %v974_v55 = vmul.f32 %v1736_v49, %v1736_v49 }
 0x3bc   :  { %960 = vadd.xlane.f32.xlu1 %v959_v50  ;;  %v929_v51 = vpop.f32.mrf.mxu0  ;;  %v952_v53 = vpop.f32.mrf.mxu1 }
 0x3bd   :  { %v930_v52 = vadd.f32 %v1254_v44, %v929_v51  ;;  %v976_v57 = vsel %vm88_vm0, %v974_v55, 0.0  ;;  %v1065_v55 = vld [vmem:[%s1838_s8] sm:$0xff] }
 0x3bf   :  { %v953_v54 = vadd.f32 %v952_v53, %v930_v52  ;;  %v1067_v53 = vld [vmem:[%s1838_s8 + $0x10] sm:$0xff] }
 0x3c0   :  { %1096 = vmatpush.msra.mxu3 %v1067_v53 }
 0x3c1   :  { %v1743_v56 = vadd.f32 %v953_v54, %v1466_v16  ;;  %v968_v16 = vmul.f32 %v1294_v61, %v967_v63  ;;  %v1066_v54 = vld [vmem:[%s1838_s8 + $0x8] sm:$0xff] }
 0x3c2   :  { %1097 = vmatpush.msra.mxu3 %v1066_v54 }
 0x3c3   :  { %v962_v6 = vsel %vm88_vm0, %v1743_v56, 0.0  ;;  %v975_v58 = vmul.f32 %v1743_v56, %v1743_v56  ;;  %v969_v0 = vadd.f32 %v1294_v61, %v968_v16 }
 0x3c4   :  { %977 = vadd.xlane.f32.xlu1 %v976_v57  ;;  %963 = vadd.xlane.f32.xlu0 %v962_v6 }
 0x3c5   :  { %v979_v59 = vsel %vm88_vm0, %v975_v58, 0.0  ;;  %v1751_v2 = vsel %vm970_vm7, %v1294_v61, %v969_v0  ;;  %1098 = vmatpush.msra.mxu3 %v1065_v55 }
 0x3cc   :  { %980 = vadd.xlane.f32.xlu1 %v979_v59 }
 0x42f   :  { %v961_v1 = vpop.xlane.xlu1 %960 }
 0x430   :  { %v972_v4 = vmul.f32 %v1751_v2, %v961_v1 }
 0x432   :  { %v984_v10 = vmul.f32 %v972_v4, %v972_v4  ;;  %v990_v37 = vsub.f32 %v1736_v49, %v972_v4 }
 0x437   :  { %v978_v8 = vpop.xlane.xlu1 %977  ;;  %v964_v12 = vpop.xlane.xlu0 %963 }
 0x438   :  { %v982_v11 = vmul.f32 %v978_v8, %v1751_v2  ;;  %v973_v15 = vmul.f32 %v1751_v2, %v964_v12 }
 0x43a   :  { %v986_v13 = vsub.f32 %v982_v11, %v984_v10  ;;  %v985_v19 = vmul.f32 %v973_v15, %v973_v15  ;;  %v991_v48 = vsub.f32 %v1743_v56, %v973_v15  ;;  %v1257_v56 = vld [vmem:[%s1837_s7] ss:$0 sm:$0xff] }
 0x43c   :  { %v988_v14 = vmax.f32 %v986_v13, 0.0 }
 0x43e   :  { %v992_v17 = vadd.f32 1e-06, %v988_v14 }
 0x43f   :  { %v981_v18 = vpop.xlane.xlu1 %980 }
 0x440   :  { %1295 = vrsqrt.f32 %v992_v17  ;;  %v983_v20 = vmul.f32 %v981_v18, %v1751_v2  ;;  %vm1000_vm9 = vweird.f32 %v992_v17 }
 0x442   :  { %v987_v23 = vsub.f32 %v983_v20, %v985_v19 }
 0x444   :  { %v989_v25 = vmax.f32 %v987_v23, 0.0 }
 0x446   :  { %v1296_v27 = vpop.eup %1295  ;;  %v993_v28 = vadd.f32 1e-06, %v989_v25 }
 0x447   :  { %v995_v30 = vmul.f32 %v1296_v27, %v992_v17  ;;  %vm1001_vm8 = vweird.f32 %v1296_v27 }
 0x448   :  { %1297 = vrsqrt.f32 %v993_v28  ;;  %vm1002_vm10 = vmor %vm1000_vm9, %vm1001_vm8  ;;  %vm1010_vm12 = vweird.f32 %v993_v28 }
 0x449   :  { %v996_v31 = vmul.f32 %v1296_v27, %v995_v30 }
 0x44b   :  { %v997_v32 = vmul.f32 0.5, %v996_v31 }
 0x44d   :  { %v998_v33 = vsub.f32 1.5, %v997_v32 }
 0x44e   :  { %v1298_v34 = vpop.eup %1297 }
 0x44f   :  { %v999_v35 = vmul.f32 %v1296_v27, %v998_v33  ;;  %v1005_v36 = vmul.f32 %v1298_v34, %v993_v28  ;;  %vm1011_vm11 = vweird.f32 %v1298_v34 }
 0x450   :  { %vm1012_vm13 = vmor %vm1010_vm12, %vm1011_vm11 }
 0x451   :  { %v1003_v39 = vsel %vm1002_vm10, %v1296_v27, %v999_v35  ;;  %v1006_v40 = vmul.f32 %v1298_v34, %v1005_v36  ;;  %v1259_v36 = vld [vmem:[%s1842_s12] ss:$0 sm:$0xff]  ;;  %s1331_s12 = smov [#allocation2]  }
 0x452   :  { %v1014_v41 = vmul.f32 %v1003_v39, %v990_v37  ;;  %s1176_s30 = sshll.u32 %s1331_s12, 4  ;;  %s1177_s30 = int_to_ptr.vmem [resolvable:$true] %s1176_s30 }
 0x453   :  { %v1007_v43 = vmul.f32 0.5, %v1006_v40 }
 0x454   :  { %v1019_v44 = vmul.f32 %v1255_v38, %v1014_v41 }
 0x455   :  { %v1008_v45 = vsub.f32 1.5, %v1007_v43 }
 0x456   :  { %v1024_v46 = vadd.f32 %v1256_v42, %v1019_v44 }
 0x457   :  { %v1009_v47 = vmul.f32 %v1298_v34, %v1008_v45 }
 0x458   :  { %1226 = vmatmul.msk.f32.vlgmr.msrb.gmra.mxu2 %vm88_vm0, %v1024_v46 }
 0x459   :  { %v1013_v49 = vsel %vm1012_vm13, %v1298_v34, %v1009_v47 }
 0x45a   :  { %v1015_v50 = vmul.f32 %v1013_v49, %v991_v48 }
 0x45c   :  { %v1020_v51 = vmul.f32 %v1255_v38, %v1015_v50 }
 0x45e   :  { %v1025_v52 = vadd.f32 %v1256_v42, %v1020_v51 }
 0x460   :  { %1227 = vmatmul.msk.f32.gmra.mxu2 %vm88_vm0, %v1025_v52 }
 0x4db   :  { %v1057_v57 = vpop.f32.mrf.mxu2 }
 0x4dc   :  { %v1058_v6 = vadd.f32 %v1257_v56, %v1057_v57 }
 0x4de   :  { %v1063_v58 = vmax.f32 %v1058_v6, 0.0 }
 0x4e0   :  { %1228 = vmatmul.msk.f32.vlgmr.msra.gmra.mxu3 %vm283_vm1, %v1063_v58 }
 0x4e3   :  { %v1060_v59 = vpop.f32.mrf.mxu2 }
 0x4e4   :  { %v1061_v60 = vadd.f32 %v1257_v56, %v1060_v59 }
 0x4e6   :  { %v1064_v61 = vmax.f32 %v1061_v60, 0.0 }
 0x4e8   :  { %1229 = vmatmul.msk.f32.gmra.mxu3 %vm283_vm1, %v1064_v61 }
 0x563   :  { %v1100_v63 = vpop.f32.mrf.mxu3 }
 0x564   :  { %v1101_v16 = vadd.f32 %v1258_v62, %v1100_v63 }
 0x566   :  { %v1106_v0 = vadd.f32 %v1101_v16, %v1024_v46 }
 0x568   :  { %v1110_v1 = vsel %vm88_vm0, %v1106_v0, 0.0  ;;  %v1118_v3 = vmul.f32 %v1106_v0, %v1106_v0 }
 0x569   :  { %1111 = vadd.xlane.f32.xlu2 %v1110_v1 }
 0x56a   :  { %v1120_v4 = vsel %vm88_vm0, %v1118_v3, 0.0 }
 0x56b   :  { %1121 = vadd.xlane.f32.xlu1 %v1120_v4  ;;  %v1103_v5 = vpop.f32.mrf.mxu3 }
 0x56c   :  { %v1104_v7 = vadd.f32 %v1258_v62, %v1103_v5 }
 0x56e   :  { %v1107_v8 = vadd.f32 %v1104_v7, %v1025_v52 }
 0x570   :  { %v1113_v9 = vsel %vm88_vm0, %v1107_v8, 0.0  ;;  %v1119_v10 = vmul.f32 %v1107_v8, %v1107_v8 }
 0x572   :  { %v1123_v11 = vsel %vm88_vm0, %v1119_v10, 0.0 }
 0x573   :  { %1114 = vadd.xlane.f32.xlu1 %v1113_v9 }
 0x57b   :  { %1124 = vadd.xlane.f32.xlu1 %v1123_v11 }
 0x5dc   :  { %v1112_v12 = vpop.xlane.xlu2 %1111 }
 0x5dd   :  { %v1116_v13 = vmul.f32 %v1112_v12, %v1751_v2 }
 0x5de   :  { %v1122_v14 = vpop.xlane.xlu1 %1121 }
 0x5df   :  { %v1128_v15 = vmul.f32 %v1116_v13, %v1116_v13  ;;  %v1126_v17 = vmul.f32 %v1122_v14, %v1751_v2  ;;  %v1134_v35 = vsub.f32 %v1106_v0, %v1116_v13 }
 0x5e1   :  { %v1130_v18 = vsub.f32 %v1126_v17, %v1128_v15 }
 0x5e3   :  { %v1132_v19 = vmax.f32 %v1130_v18, 0.0 }
 0x5e5   :  { %v1136_v20 = vadd.f32 1e-06, %v1132_v19 }
 0x5e6   :  { %v1115_v21 = vpop.xlane.xlu1 %1114 }
 0x5e7   :  { %1299 = vrsqrt.f32 %v1136_v20  ;;  %v1117_v22 = vmul.f32 %v1115_v21, %v1751_v2  ;;  %vm1144_vm14 = vweird.f32 %v1136_v20 }
 0x5e9   :  { %v1129_v26 = vmul.f32 %v1117_v22, %v1117_v22  ;;  %v1135_v47 = vsub.f32 %v1107_v8, %v1117_v22 }
 0x5ed   :  { %v1300_v23 = vpop.eup %1299 }
 0x5ee   :  { %v1139_v24 = vmul.f32 %v1300_v23, %v1136_v20  ;;  %v1125_v25 = vpop.xlane.xlu1 %1124  ;;  %vm1145_vm1 = vweird.f32 %v1300_v23 }
 0x5ef   :  { %v1127_v27 = vmul.f32 %v1125_v25, %v1751_v2  ;;  %vm1146_vm15 = vmor %vm1144_vm14, %vm1145_vm1  ;;  %v1260_v2 = vld [vmem:[%s1843_s13] ss:$0 sm:$0xff] }
 0x5f0   :  { %v1140_v28 = vmul.f32 %v1300_v23, %v1139_v24 }
 0x5f1   :  { %v1131_v29 = vsub.f32 %v1127_v27, %v1129_v26 }
 0x5f2   :  { %v1141_v30 = vmul.f32 0.5, %v1140_v28 }
 0x5f3   :  { %v1133_v31 = vmax.f32 %v1131_v29, 0.0 }
 0x5f4   :  { %v1142_v32 = vsub.f32 1.5, %v1141_v30 }
 0x5f5   :  { %v1137_v33 = vadd.f32 1e-06, %v1133_v31 }
 0x5f6   :  { %v1143_v34 = vmul.f32 %v1300_v23, %v1142_v32 }
 0x5f7   :  { %1301 = vrsqrt.f32 %v1137_v33  ;;  %vm1154_vm3 = vweird.f32 %v1137_v33 }
 0x5f8   :  { %v1147_v37 = vsel %vm1146_vm15, %v1300_v23, %v1143_v34 }
 0x5f9   :  { %v1158_v38 = vmul.f32 %v1147_v37, %v1134_v35 }
 0x5fb   :  { %v1163_v39 = vmul.f32 %v1259_v36, %v1158_v38 }
 0x5fd   :  { %v1302_v40 = vpop.eup %1301  ;;  %v1168_v41 = vadd.f32 %v1260_v2, %v1163_v39 }
 0x5fe   :  { %v1149_v42 = vmul.f32 %v1302_v40, %v1137_v33  ;;  %vm1155_vm2 = vweird.f32 %v1302_v40 }
 0x5ff   :  { %1170 = vst.msk [vmem:[#allocation2] sm:$0xff] %vm88_vm0, %v1168_v41  ;;  %vm1156_vm4 = vmor %vm1154_vm3, %vm1155_vm2 }
 0x600   :  { %v1150_v43 = vmul.f32 %v1302_v40, %v1149_v42 }
 0x602   :  { %v1151_v44 = vmul.f32 0.5, %v1150_v43 }
 0x604   :  { %v1152_v45 = vsub.f32 1.5, %v1151_v44 }
 0x606   :  { %v1153_v46 = vmul.f32 %v1302_v40, %v1152_v45 }
 0x608   :  { %v1157_v48 = vsel %vm1156_vm4, %v1302_v40, %v1153_v46 }
 0x609   :  { %v1159_v49 = vmul.f32 %v1157_v48, %v1135_v47 }
 0x60b   :  { %v1164_v50 = vmul.f32 %v1259_v36, %v1159_v49 }
 0x60d   :  { %v1169_v51 = vadd.f32 %v1260_v2, %v1164_v50 }
 0x60f   :  { %1171 = vst.msk [vmem:[#allocation2 + $0x8] sm:$0xff] %vm88_vm0, %v1169_v51 }
 0x610   :  { %1184 = dma.vmem_to_hbm [thread:$0]  %s1177_s30, 256, %s1179_s6, [#allocation3], %s1332_s16, %s1332_s16, %s1333_s0  }
 0x611   :  { %1327 = dma.done.wait [#allocation3], 256  }
 0x612   :  { %1328 = vsyncadd [#allocation3], 4294967040 }
 0x613   :  { %1189 = vsyncpa [#allocation3], 1 }

</bundles_post_ra>
